<compile_context>
chip_gen: v5e
topology: v5e:2x2
jax: 0.10.0
libtpu: 0.0.40
codegen_flags: <defaults>
</compile_context>

<pallas_src>
import functools

import jax
import jax.numpy as jnp
from jax.experimental import pallas as pl
from jax.experimental.pallas import tpu as pltpu


def _round_up(x, m):
    return ((x + m - 1) // m) * m


def _choose_e_tile(E, B):
    """Largest 128-aligned tile dividing E, keeping >= 4 total grid steps
    (>= 2 steps per v7x TensorCore) when possible."""
    candidates = (4096, 2048, 1024, 512, 256, 128)
    divisors = [c for c in candidates if E % c == 0]
    assert divisors, "E must be padded to a multiple of 128 before tiling"
    for c in divisors:
        if B * (E // c) >= 4:
            return c
    return divisors[-1]


# ---------------------------------------------------------------------------
# Kernels: y(Cout, TE) = W(Cout, K) @ G(K, TE), f32 MXU accumulation, with
# optional fused ReLU, fused residual add, and fused BatchNorm partial stats.
# Batch dim is squeezed out of all refs; E stays lane-dense.
# ---------------------------------------------------------------------------

def _conv_kernel(g_ref, w_ref, o_ref, *, relu_out):
    y = jnp.dot(w_ref[...], g_ref[...], preferred_element_type=jnp.float32)
    if relu_out:
        y = jnp.maximum(y, 0.0)
    o_ref[...] = y.astype(o_ref.dtype)


def _conv_stats_kernel(g_ref, w_ref, o_ref, sum_ref, ssq_ref, *, relu_out):
    y = jnp.dot(w_ref[...], g_ref[...], preferred_element_type=jnp.float32)
    a = jnp.maximum(y, 0.0)                       # BatchNorm consumes relu(y)
    o_ref[...] = (a if relu_out else y).astype(o_ref.dtype)
    # Per-channel partial stats over this E tile (lane reduction on the XLU,
    # free while the kernel is DMA-bound).
    sum_ref[...] = jnp.sum(a, axis=1, keepdims=True)
    ssq_ref[...] = jnp.sum(a * a, axis=1, keepdims=True)


def _conv_res_kernel(g_ref, w_ref, r_ref, o_ref, *, relu_out):
    y = jnp.dot(w_ref[...], g_ref[...], preferred_element_type=jnp.float32)
    y = y + r_ref[...].astype(jnp.float32)        # bf16 residual, f32 add
    if relu_out:
        y = jnp.maximum(y, 0.0)
    o_ref[...] = y.astype(o_ref.dtype)


def meshconv_pallas(G, W, *, residual=None, relu_out=False, emit_stats=False,
                    out_dtype=jnp.bfloat16):
    """MeshConv (bias=False) as a lane-dense matmul over edge tiles.

    G: (B, K, E) GeMM features (K = 5*Cin, E lane-dense, multiple of 128).
    W: (Cout, K).  Optionally fuses a residual add (residual (B, Cout, E),
    stored/streamed bf16, added in f32), a ReLU epilogue, and BatchNorm
    partial statistics.  Returns y, or (y, sums, ssqs) when emit_stats.
    """
    B, K, E = G.shape
    Cout = W.shape[0]
    assert E % 128 == 0, "pad E to a multiple of 128 before calling"
    TE = _choose_e_tile(E, B)
    nE = E // TE
    grid = (B, nE)

    G = G.astype(jnp.bfloat16)            # dominant HBM stream, half-width
    W = W.astype(jnp.bfloat16)            # MXU-native weights, resident across grid

    g_spec = pl.BlockSpec((None, K, TE), lambda b, e: (b, 0, e))
    w_spec = pl.BlockSpec((Cout, K), lambda b, e: (0, 0))     # resident
    o_spec = pl.BlockSpec((None, Cout, TE), lambda b, e: (b, 0, e))

    out_itemsize = jnp.dtype(out_dtype).itemsize
    in_specs = [g_spec, w_spec]
    args = [G, W]
    out_shapes = [jax.ShapeDtypeStruct((B, Cout, E), out_dtype)]
    out_specs = [o_spec]
    bytes_accessed = G.size * 2 + W.size * 2 + B * Cout * E * out_itemsize

    if residual is not None:
        assert not emit_stats
        kernel = functools.partial(_conv_res_kernel, relu_out=relu_out)
        in_specs.append(o_spec)                     # same tiling as output
        args.append(residual.astype(jnp.bfloat16))  # bf16 residual stream
        bytes_accessed += B * Cout * E * 2
    elif emit_stats:
        kernel = functools.partial(_conv_stats_kernel, relu_out=relu_out)
        s_spec = pl.BlockSpec((None, None, Cout, 1), lambda b, e: (b, e, 0, 0))
        out_shapes += [jax.ShapeDtypeStruct((B, nE, Cout, 1), jnp.float32)] * 2
        out_specs += [s_spec, s_spec]
        bytes_accessed += 2 * B * nE * Cout * 4
    else:
        kernel = functools.partial(_conv_kernel, relu_out=relu_out)

    # Explicit VMEM budget (double-buffered I/O tiles + resident W, 3x slack),
    # sized against v7x's 64 MiB physical VMEM; never below the scoped default.
    step_bytes = (K * TE * 2 + Cout * TE * out_itemsize
                  + (Cout * TE * 2 if residual is not None else 0)
                  + (2 * Cout * 128 * 4 if emit_stats else 0))
    vmem_limit = int(min(64 * 1024 * 1024,
                         max(16 * 1024 * 1024,
                             3 * (2 * step_bytes + Cout * K * 2))))

    cost = pl.CostEstimate(flops=2 * B * Cout * K * E, transcendentals=0,
                           bytes_accessed=int(bytes_accessed))

    return pl.pallas_call(
        kernel,
        out_shape=tuple(out_shapes) if len(out_shapes) > 1 else out_shapes[0],
        grid_spec=pltpu.PrefetchScalarGridSpec(
            num_scalar_prefetch=0,
            grid=grid,
            in_specs=in_specs,
            out_specs=out_specs if len(out_specs) > 1 else out_specs[0],
        ),
        compiler_params=pltpu.CompilerParams(
            dimension_semantics=("parallel", "parallel"),
            vmem_limit_bytes=vmem_limit),
        cost_estimate=cost,
    )(*args)


# ---------------------------------------------------------------------------
# JAX glue: MeshCNN GeMM feature construction and BatchNorm application.
# ---------------------------------------------------------------------------

def build_mesh_gemm(x, gemm):
    """MeshCNN GeMM feature construction (data-dependent gather, XLA glue).

    x: (B, C, E) edge features (bf16 recommended so G is built bf16 at the
    producer).  gemm: (E, 4) int32 neighbor edge ids; -1 = missing neighbor
    (contributes a zero feature, MeshCNN padding convention).
    Returns G: (B, 5*C, E) with (channel, tap) flattened channel-major to match
    Conv2d(in, out, (1, 5)).weight.reshape(out, in*5).
    """
    B, C, E = x.shape
    valid = (gemm >= 0)
    idx = jnp.where(valid, gemm, 0)
    nbr = jnp.take(x, idx, axis=2)                            # (B, C, E, 4)
    nbr = nbr * valid.astype(x.dtype)[None, None, :, :]
    f1, f2, f3, f4 = nbr[..., 0], nbr[..., 1], nbr[..., 2], nbr[..., 3]
    feats = jnp.stack(
        [x, f1 + f3, f2 + f4, jnp.abs(f1 - f3), jnp.abs(f2 - f4)], axis=2)
    return feats.reshape(B, C * 5, E)                         # (B, 5C, E)


def _apply_bn(h, sums, ssqs, gamma, beta, count, relu_first, edge_mask, eps):
    """BatchNorm2d (train mode, batch stats) using the kernel's partial stats
    of relu(h).  Returns bf16 activations ready for the next GeMM build."""
    s = jnp.sum(sums, axis=(0, 1))[:, 0]                      # (Cout,)
    ss = jnp.sum(ssqs, axis=(0, 1))[:, 0]
    mean = s / count
    var = jnp.maximum(ss / count - mean * mean, 0.0)          # guard cancellation
    a = h.astype(jnp.float32)
    if relu_first:
        a = jnp.maximum(a, 0.0)
    scale = gamma * jax.lax.rsqrt(var + eps)
    b = a * scale[None, :, None] + (beta - mean * scale)[None, :, None]
    if edge_mask is not None:
        b = b * edge_mask                                     # keep padded edges zero
    return b.astype(jnp.bfloat16)


def mresconv_forward(x, gemm, params, eps=1e-5):
    """MResConv.forward.

    x: (B, Cin, E) f32, gemm: (E, 4) int32 (-1 = missing neighbor).  params:
      'conv0' : (Cout, 5*Cin) weight   (MeshConv, bias=False)
      'convs' : list of (Cout, 5*Cout) weights (bias=False), one per skip
      'bn'    : list of (gamma, beta) pairs, each (Cout,), one per skip
    BatchNorm2d uses batch statistics (module-default train mode, biased var).
    # TODO(synk): eval-mode BN (running stats) not implemented.
    Returns (B, Cout, E) float32.
    """
    B, Cin, E = x.shape
    skips = len(params["convs"])

    # Pad E once to a 128-multiple; padded edges carry zero features (gemm -1)
    # and never feed real edges, so they are inert and sliced off at the end.
    E_pad = _round_up(E, 128)
    if E_pad != E:
        x = jnp.pad(x, ((0, 0), (0, 0), (0, E_pad - E)))
        gemm = jnp.pad(gemm, ((0, E_pad - E), (0, 0)), constant_values=-1)
        edge_mask = (jnp.arange(E_pad) < E).astype(jnp.float32)[None, None, :]
    else:
        edge_mask = None
    count = B * E                                             # real edges only

    G = build_mesh_gemm(x.astype(jnp.bfloat16), gemm)         # bf16 G at producer

    if skips == 0:                                            # degenerate: x += x1 == 2x
        h = meshconv_pallas(G, params["conv0"], out_dtype=jnp.float32)
        return jnp.maximum(h + h, 0.0)[:, :, :E]

    # conv0: store pre-ReLU (needed as residual x1), fuse relu-stats for bn1.
    h, sums, ssqs = meshconv_pallas(G, params["conv0"],
                                    relu_out=False, emit_stats=True,
                                    out_dtype=jnp.bfloat16)
    x1 = h                                                    # bf16 residual stream
    relu_first = True
    out = None
    for i in range(skips):
        gamma, beta = params["bn"][i]
        b = _apply_bn(h, sums, ssqs, gamma, beta, count, relu_first, edge_mask, eps)
        G = build_mesh_gemm(b, gemm)
        if i == skips - 1:
            # Last conv: fuse `x += x1; x = F.relu(x)` into the kernel epilogue.
            out = meshconv_pallas(G, params["convs"][i], residual=x1,
                                  relu_out=True, out_dtype=jnp.float32)
        else:
            h, sums, ssqs = meshconv_pallas(G, params["convs"][i],
                                            relu_out=True, emit_stats=True,
                                            out_dtype=jnp.bfloat16)
            relu_first = False                                # already relu'd in kernel
    return out[:, :, :E]


# ---------------------------------------------------------------------------
# Pure-JAX f32 reference (for tolerance validation of the bf16 kernels).
# ---------------------------------------------------------------------------

def mresconv_reference(x, gemm, params, eps=1e-5):
    def gemm_feats(x):
        B, C, E = x.shape
        valid = (gemm >= 0)
        idx = jnp.where(valid, gemm, 0)
        nbr = jnp.take(x, idx, axis=2) * valid.astype(x.dtype)[None, None, :, :]
        f1, f2, f3, f4 = nbr[..., 0], nbr[..., 1], nbr[..., 2], nbr[..., 3]
        feats = jnp.stack(
            [x, f1 + f3, f2 + f4, jnp.abs(f1 - f3), jnp.abs(f2 - f4)], axis=2)
        return feats.reshape(B, C * 5, E)

    def conv(x, w):
        return jnp.einsum("ok,bke->boe", w, gemm_feats(x))

    h = conv(x, params["conv0"])
    x1 = h
    for i in range(len(params["convs"])):
        gamma, beta = params["bn"][i]
        a = jnp.maximum(h, 0.0)
        mean = jnp.mean(a, axis=(0, 2), keepdims=True)
        var = jnp.mean(jnp.square(a - mean), axis=(0, 2), keepdims=True)
        b = (a - mean) * jax.lax.rsqrt(var + eps)
        b = b * gamma[None, :, None] + beta[None, :, None]
        h = conv(b, params["convs"][i])
    return jnp.maximum(h + x1, 0.0)


def _init_meshconv_weight(key, in_ch, out_ch):
    # Conv2d(in, out, (1,5), bias=False) weight reshaped to (out, in*5).
    fan_in = in_ch * 5
    std = (2.0 / fan_in) ** 0.5
    return jax.random.normal(key, (out_ch, in_ch * 5), dtype=jnp.float32) * std


if __name__ == "__main__":
    key = jax.random.PRNGKey(0)
    # E=1000 exercises the 128-padding path (E_pad=1024 -> TE=512, grid (2,2)).
    B, Cin, Cout, E, skips = 2, 16, 32, 1000, 2

    k_x, k_g, k_w = jax.random.split(key, 3)
    x = jax.random.normal(k_x, (B, Cin, E), dtype=jnp.float32)
    gemm = jax.random.randint(k_g, (E, 4), 0, E, dtype=jnp.int32)
    # Sprinkle some -1 (missing-neighbor) entries to exercise boundary handling.
    gemm = gemm.at[:, 3].set(jnp.where(jnp.arange(E) % 17 == 0, -1, gemm[:, 3]))

    wkeys = jax.random.split(k_w, skips + 1)
    params = {
        "conv0": _init_meshconv_weight(wkeys[0], Cin, Cout),
        "convs": [_init_meshconv_weight(wkeys[i + 1], Cout, Cout)
                  for i in range(skips)],
        "bn": [(jnp.ones((Cout,), jnp.float32), jnp.zeros((Cout,), jnp.float32))
               for _ in range(skips)],
    }

    fwd = jax.jit(mresconv_forward)
    out = jax.block_until_ready(fwd(x, gemm, params))
    assert out.shape == (B, Cout, E)
    assert bool(jnp.all(out >= 0.0))                    # final fused ReLU
    assert bool(jnp.all(jnp.isfinite(out)))

    ref = mresconv_reference(x, gemm, params)
    rel_err = float(jnp.linalg.norm(out - ref) / (jnp.linalg.norm(ref) + 1e-6))
    assert rel_err < 0.05, f"relative error vs f32 reference too large: {rel_err}"

    print("KERNEL_OK")
</pallas_src>

<mosaic_0001>
module attributes {stable_mosaic.version = 11 : i64} {
  func.func @_conv_stats_kernel(%arg0: i32, %arg1: i32, %arg2: memref<1x80x512xbf16, #tpu.memory_space<vmem>>, %arg3: memref<32x80xbf16, #tpu.memory_space<vmem>>, %arg4: memref<1x32x512xbf16, #tpu.memory_space<vmem>>, %arg5: memref<1x1x32x1xf32, #tpu.memory_space<vmem>>, %arg6: memref<1x1x32x1xf32, #tpu.memory_space<vmem>>) attributes {dimension_semantics = [#tpu.dimension_semantics<parallel>, #tpu.dimension_semantics<parallel>], iteration_bounds = array<i64: 2, 2>, scalar_prefetch = 0 : i64, scratch_operands = 0 : i64, tpu.core_type = #tpu.core_type<tc>, window_params = [{transform_indices = @transform_0, window_bounds = array<i64: 1, 80, 512>}, {pipeline_mode = #tpu.pipeline_mode<synchronous>, transform_indices = @transform_1, window_bounds = array<i64: 32, 80>}, {transform_indices = @transform_2, window_bounds = array<i64: 1, 32, 512>}, {transform_indices = @transform_3, window_bounds = array<i64: 1, 1, 32, 1>}, {transform_indices = @transform_4, window_bounds = array<i64: 1, 1, 32, 1>}]} {
    %c0 = arith.constant 0 : index
    %c0_0 = arith.constant 0 : index
    %0 = vector.load %arg3[%c0, %c0_0] : memref<32x80xbf16, #tpu.memory_space<vmem>>, vector<32x80xbf16>
    %c0_1 = arith.constant 0 : index
    %c0_2 = arith.constant 0 : index
    %c0_3 = arith.constant 0 : index
    %1 = vector.load %arg2[%c0_1, %c0_2, %c0_3] : memref<1x80x512xbf16, #tpu.memory_space<vmem>>, vector<1x80x512xbf16>
    %2 = vector.shape_cast %1 : vector<1x80x512xbf16> to vector<80x512xbf16>
    %cst = arith.constant dense<0.000000e+00> : vector<32x512xf32>
    %3 = tpu.matmul %0, %2, %cst {dimension_numbers = #tpu.dot_dimension_numbers<[1], [0], [0], [1], [0, 0, 1, 1], [], []>} : vector<32x80xbf16>, vector<80x512xbf16>, vector<32x512xf32> -> vector<32x512xf32>
    %cst_4 = arith.constant 0.000000e+00 : f32
    %4 = vector.broadcast %cst_4 : f32 to vector<32x512xf32>
    %5 = arith.maximumf %3, %4 : vector<32x512xf32>
    %6 = arith.truncf %3 : vector<32x512xf32> to vector<32x512xbf16>
    %c0_5 = arith.constant 0 : index
    %c0_6 = arith.constant 0 : index
    %c0_7 = arith.constant 0 : index
    %7 = vector.load %arg4[%c0_5, %c0_6, %c0_7] : memref<1x32x512xbf16, #tpu.memory_space<vmem>>, vector<1x32x512xbf16>
    %8 = vector.shape_cast %7 : vector<1x32x512xbf16> to vector<32x512xbf16>
    %9 = vector.shape_cast %6 : vector<32x512xbf16> to vector<1x32x512xbf16>
    tpu.vector_store %arg4[%c0_5, %c0_6, %c0_7], %9 {strides = array<i32>} : memref<1x32x512xbf16, #tpu.memory_space<vmem>>, vector<1x32x512xbf16>,
    %cst_8 = arith.constant dense<0.000000e+00> : vector<32xf32>
    %10 = vector.multi_reduction <add>, %5, %cst_8 [1] : vector<32x512xf32> to vector<32xf32>
    %11 = vector.shape_cast %10 : vector<32xf32> to vector<32x1xf32>
    %c0_9 = arith.constant 0 : index
    %c0_10 = arith.constant 0 : index
    %c0_11 = arith.constant 0 : index
    %c0_12 = arith.constant 0 : index
    %12 = vector.load %arg5[%c0_9, %c0_10, %c0_11, %c0_12] : memref<1x1x32x1xf32, #tpu.memory_space<vmem>>, vector<1x1x32x1xf32>
    %13 = vector.shape_cast %12 : vector<1x1x32x1xf32> to vector<32x1xf32>
    %14 = vector.shape_cast %11 : vector<32x1xf32> to vector<1x1x32x1xf32>
    tpu.vector_store %arg5[%c0_9, %c0_10, %c0_11, %c0_12], %14 {strides = array<i32>} : memref<1x1x32x1xf32, #tpu.memory_space<vmem>>, vector<1x1x32x1xf32>,
    %15 = arith.mulf %5, %5 : vector<32x512xf32>
    %cst_13 = arith.constant dense<0.000000e+00> : vector<32xf32>
    %16 = vector.multi_reduction <add>, %15, %cst_13 [1] : vector<32x512xf32> to vector<32xf32>
    %17 = vector.shape_cast %16 : vector<32xf32> to vector<32x1xf32>
    %c0_14 = arith.constant 0 : index
    %c0_15 = arith.constant 0 : index
    %c0_16 = arith.constant 0 : index
    %c0_17 = arith.constant 0 : index
    %18 = vector.load %arg6[%c0_14, %c0_15, %c0_16, %c0_17] : memref<1x1x32x1xf32, #tpu.memory_space<vmem>>, vector<1x1x32x1xf32>
    %19 = vector.shape_cast %18 : vector<1x1x32x1xf32> to vector<32x1xf32>
    %20 = vector.shape_cast %17 : vector<32x1xf32> to vector<1x1x32x1xf32>
    tpu.vector_store %arg6[%c0_14, %c0_15, %c0_16, %c0_17], %20 {strides = array<i32>} : memref<1x1x32x1xf32, #tpu.memory_space<vmem>>, vector<1x1x32x1xf32>,
    return
  }
  func.func @transform_0(%arg0: i32, %arg1: i32) -> (i32, i32, i32) {
    %c0_i32 = arith.constant 0 : i32
    %c0_i32_0 = arith.constant 0 : i32
    return %arg0, %c0_i32, %arg1 : i32, i32, i32
  }
  func.func @transform_1(%arg0: i32, %arg1: i32) -> (i32, i32) {
    %c0_i32 = arith.constant 0 : i32
    %c0_i32_0 = arith.constant 0 : i32
    %c0_i32_1 = arith.constant 0 : i32
    return %c0_i32, %c0_i32_0 : i32, i32
  }
  func.func @transform_2(%arg0: i32, %arg1: i32) -> (i32, i32, i32) {
    %c0_i32 = arith.constant 0 : i32
    %c0_i32_0 = arith.constant 0 : i32
    return %arg0, %c0_i32, %arg1 : i32, i32, i32
  }
  func.func @transform_3(%arg0: i32, %arg1: i32) -> (i32, i32, i32, i32) {
    %c0_i32 = arith.constant 0 : i32
    %c0_i32_0 = arith.constant 0 : i32
    %c0_i32_1 = arith.constant 0 : i32
    return %arg0, %arg1, %c0_i32, %c0_i32_0 : i32, i32, i32, i32
  }
  func.func @transform_4(%arg0: i32, %arg1: i32) -> (i32, i32, i32, i32) {
    %c0_i32 = arith.constant 0 : i32
    %c0_i32_0 = arith.constant 0 : i32
    %c0_i32_1 = arith.constant 0 : i32
    return %arg0, %arg1, %c0_i32, %c0_i32_0 : i32, i32, i32, i32
  }
}

module attributes {stable_mosaic.version = 11 : i64} {
  func.func @_conv_stats_kernel(%arg0: i32, %arg1: i32, %arg2: memref<1x160x512xbf16, #tpu.memory_space<vmem>>, %arg3: memref<32x160xbf16, #tpu.memory_space<vmem>>, %arg4: memref<1x32x512xbf16, #tpu.memory_space<vmem>>, %arg5: memref<1x1x32x1xf32, #tpu.memory_space<vmem>>, %arg6: memref<1x1x32x1xf32, #tpu.memory_space<vmem>>) attributes {dimension_semantics = [#tpu.dimension_semantics<parallel>, #tpu.dimension_semantics<parallel>], iteration_bounds = array<i64: 2, 2>, scalar_prefetch = 0 : i64, scratch_operands = 0 : i64, tpu.core_type = #tpu.core_type<tc>, window_params = [{transform_indices = @transform_0, window_bounds = array<i64: 1, 160, 512>}, {pipeline_mode = #tpu.pipeline_mode<synchronous>, transform_indices = @transform_1, window_bounds = array<i64: 32, 160>}, {transform_indices = @transform_2, window_bounds = array<i64: 1, 32, 512>}, {transform_indices = @transform_3, window_bounds = array<i64: 1, 1, 32, 1>}, {transform_indices = @transform_4, window_bounds = array<i64: 1, 1, 32, 1>}]} {
    %c0 = arith.constant 0 : index
    %c0_0 = arith.constant 0 : index
    %0 = vector.load %arg3[%c0, %c0_0] : memref<32x160xbf16, #tpu.memory_space<vmem>>, vector<32x160xbf16>
    %c0_1 = arith.constant 0 : index
    %c0_2 = arith.constant 0 : index
    %c0_3 = arith.constant 0 : index
    %1 = vector.load %arg2[%c0_1, %c0_2, %c0_3] : memref<1x160x512xbf16, #tpu.memory_space<vmem>>, vector<1x160x512xbf16>
    %2 = vector.shape_cast %1 : vector<1x160x512xbf16> to vector<160x512xbf16>
    %cst = arith.constant dense<0.000000e+00> : vector<32x512xf32>
    %3 = tpu.matmul %0, %2, %cst {dimension_numbers = #tpu.dot_dimension_numbers<[1], [0], [0], [1], [0, 0, 1, 1], [], []>} : vector<32x160xbf16>, vector<160x512xbf16>, vector<32x512xf32> -> vector<32x512xf32>
    %cst_4 = arith.constant 0.000000e+00 : f32
    %4 = vector.broadcast %cst_4 : f32 to vector<32x512xf32>
    %5 = arith.maximumf %3, %4 : vector<32x512xf32>
    %6 = arith.truncf %5 : vector<32x512xf32> to vector<32x512xbf16>
    %c0_5 = arith.constant 0 : index
    %c0_6 = arith.constant 0 : index
    %c0_7 = arith.constant 0 : index
    %7 = vector.load %arg4[%c0_5, %c0_6, %c0_7] : memref<1x32x512xbf16, #tpu.memory_space<vmem>>, vector<1x32x512xbf16>
    %8 = vector.shape_cast %7 : vector<1x32x512xbf16> to vector<32x512xbf16>
    %9 = vector.shape_cast %6 : vector<32x512xbf16> to vector<1x32x512xbf16>
    tpu.vector_store %arg4[%c0_5, %c0_6, %c0_7], %9 {strides = array<i32>} : memref<1x32x512xbf16, #tpu.memory_space<vmem>>, vector<1x32x512xbf16>,
    %cst_8 = arith.constant dense<0.000000e+00> : vector<32xf32>
    %10 = vector.multi_reduction <add>, %5, %cst_8 [1] : vector<32x512xf32> to vector<32xf32>
    %11 = vector.shape_cast %10 : vector<32xf32> to vector<32x1xf32>
    %c0_9 = arith.constant 0 : index
    %c0_10 = arith.constant 0 : index
    %c0_11 = arith.constant 0 : index
    %c0_12 = arith.constant 0 : index
    %12 = vector.load %arg5[%c0_9, %c0_10, %c0_11, %c0_12] : memref<1x1x32x1xf32, #tpu.memory_space<vmem>>, vector<1x1x32x1xf32>
    %13 = vector.shape_cast %12 : vector<1x1x32x1xf32> to vector<32x1xf32>
    %14 = vector.shape_cast %11 : vector<32x1xf32> to vector<1x1x32x1xf32>
    tpu.vector_store %arg5[%c0_9, %c0_10, %c0_11, %c0_12], %14 {strides = array<i32>} : memref<1x1x32x1xf32, #tpu.memory_space<vmem>>, vector<1x1x32x1xf32>,
    %15 = arith.mulf %5, %5 : vector<32x512xf32>
    %cst_13 = arith.constant dense<0.000000e+00> : vector<32xf32>
    %16 = vector.multi_reduction <add>, %15, %cst_13 [1] : vector<32x512xf32> to vector<32xf32>
    %17 = vector.shape_cast %16 : vector<32xf32> to vector<32x1xf32>
    %c0_14 = arith.constant 0 : index
    %c0_15 = arith.constant 0 : index
    %c0_16 = arith.constant 0 : index
    %c0_17 = arith.constant 0 : index
    %18 = vector.load %arg6[%c0_14, %c0_15, %c0_16, %c0_17] : memref<1x1x32x1xf32, #tpu.memory_space<vmem>>, vector<1x1x32x1xf32>
    %19 = vector.shape_cast %18 : vector<1x1x32x1xf32> to vector<32x1xf32>
    %20 = vector.shape_cast %17 : vector<32x1xf32> to vector<1x1x32x1xf32>
    tpu.vector_store %arg6[%c0_14, %c0_15, %c0_16, %c0_17], %20 {strides = array<i32>} : memref<1x1x32x1xf32, #tpu.memory_space<vmem>>, vector<1x1x32x1xf32>,
    return
  }
  func.func @transform_0(%arg0: i32, %arg1: i32) -> (i32, i32, i32) {
    %c0_i32 = arith.constant 0 : i32
    %c0_i32_0 = arith.constant 0 : i32
    return %arg0, %c0_i32, %arg1 : i32, i32, i32
  }
  func.func @transform_1(%arg0: i32, %arg1: i32) -> (i32, i32) {
    %c0_i32 = arith.constant 0 : i32
    %c0_i32_0 = arith.constant 0 : i32
    %c0_i32_1 = arith.constant 0 : i32
    return %c0_i32, %c0_i32_0 : i32, i32
  }
  func.func @transform_2(%arg0: i32, %arg1: i32) -> (i32, i32, i32) {
    %c0_i32 = arith.constant 0 : i32
    %c0_i32_0 = arith.constant 0 : i32
    return %arg0, %c0_i32, %arg1 : i32, i32, i32
  }
  func.func @transform_3(%arg0: i32, %arg1: i32) -> (i32, i32, i32, i32) {
    %c0_i32 = arith.constant 0 : i32
    %c0_i32_0 = arith.constant 0 : i32
    %c0_i32_1 = arith.constant 0 : i32
    return %arg0, %arg1, %c0_i32, %c0_i32_0 : i32, i32, i32, i32
  }
  func.func @transform_4(%arg0: i32, %arg1: i32) -> (i32, i32, i32, i32) {
    %c0_i32 = arith.constant 0 : i32
    %c0_i32_0 = arith.constant 0 : i32
    %c0_i32_1 = arith.constant 0 : i32
    return %arg0, %arg1, %c0_i32, %c0_i32_0 : i32, i32, i32, i32
  }
}

module attributes {stable_mosaic.version = 11 : i64} {
  func.func @_conv_res_kernel(%arg0: i32, %arg1: i32, %arg2: memref<1x160x512xbf16, #tpu.memory_space<vmem>>, %arg3: memref<32x160xbf16, #tpu.memory_space<vmem>>, %arg4: memref<1x32x512xbf16, #tpu.memory_space<vmem>>, %arg5: memref<1x32x512xf32, #tpu.memory_space<vmem>>) attributes {dimension_semantics = [#tpu.dimension_semantics<parallel>, #tpu.dimension_semantics<parallel>], iteration_bounds = array<i64: 2, 2>, scalar_prefetch = 0 : i64, scratch_operands = 0 : i64, tpu.core_type = #tpu.core_type<tc>, window_params = [{transform_indices = @transform_0, window_bounds = array<i64: 1, 160, 512>}, {pipeline_mode = #tpu.pipeline_mode<synchronous>, transform_indices = @transform_1, window_bounds = array<i64: 32, 160>}, {transform_indices = @transform_2, window_bounds = array<i64: 1, 32, 512>}, {transform_indices = @transform_3, window_bounds = array<i64: 1, 32, 512>}]} {
    %c0 = arith.constant 0 : index
    %c0_0 = arith.constant 0 : index
    %0 = vector.load %arg3[%c0, %c0_0] : memref<32x160xbf16, #tpu.memory_space<vmem>>, vector<32x160xbf16>
    %c0_1 = arith.constant 0 : index
    %c0_2 = arith.constant 0 : index
    %c0_3 = arith.constant 0 : index
    %1 = vector.load %arg2[%c0_1, %c0_2, %c0_3] : memref<1x160x512xbf16, #tpu.memory_space<vmem>>, vector<1x160x512xbf16>
    %2 = vector.shape_cast %1 : vector<1x160x512xbf16> to vector<160x512xbf16>
    %cst = arith.constant dense<0.000000e+00> : vector<32x512xf32>
    %3 = tpu.matmul %0, %2, %cst {dimension_numbers = #tpu.dot_dimension_numbers<[1], [0], [0], [1], [0, 0, 1, 1], [], []>} : vector<32x160xbf16>, vector<160x512xbf16>, vector<32x512xf32> -> vector<32x512xf32>
    %c0_4 = arith.constant 0 : index
    %c0_5 = arith.constant 0 : index
    %c0_6 = arith.constant 0 : index
    %4 = vector.load %arg4[%c0_4, %c0_5, %c0_6] : memref<1x32x512xbf16, #tpu.memory_space<vmem>>, vector<1x32x512xbf16>
    %5 = vector.shape_cast %4 : vector<1x32x512xbf16> to vector<32x512xbf16>
    %6 = arith.extf %5 : vector<32x512xbf16> to vector<32x512xf32>
    %7 = arith.addf %3, %6 : vector<32x512xf32>
    %cst_7 = arith.constant 0.000000e+00 : f32
    %8 = vector.broadcast %cst_7 : f32 to vector<32x512xf32>
    %9 = arith.maximumf %7, %8 : vector<32x512xf32>
    %c0_8 = arith.constant 0 : index
    %c0_9 = arith.constant 0 : index
    %c0_10 = arith.constant 0 : index
    %10 = vector.load %arg5[%c0_8, %c0_9, %c0_10] : memref<1x32x512xf32, #tpu.memory_space<vmem>>, vector<1x32x512xf32>
    %11 = vector.shape_cast %10 : vector<1x32x512xf32> to vector<32x512xf32>
    %12 = vector.shape_cast %9 : vector<32x512xf32> to vector<1x32x512xf32>
    tpu.vector_store %arg5[%c0_8, %c0_9, %c0_10], %12 {strides = array<i32>} : memref<1x32x512xf32, #tpu.memory_space<vmem>>, vector<1x32x512xf32>,
    return
  }
  func.func @transform_0(%arg0: i32, %arg1: i32) -> (i32, i32, i32) {
    %c0_i32 = arith.constant 0 : i32
    %c0_i32_0 = arith.constant 0 : i32
    return %arg0, %c0_i32, %arg1 : i32, i32, i32
  }
  func.func @transform_1(%arg0: i32, %arg1: i32) -> (i32, i32) {
    %c0_i32 = arith.constant 0 : i32
    %c0_i32_0 = arith.constant 0 : i32
    %c0_i32_1 = arith.constant 0 : i32
    return %c0_i32, %c0_i32_0 : i32, i32
  }
  func.func @transform_2(%arg0: i32, %arg1: i32) -> (i32, i32, i32) {
    %c0_i32 = arith.constant 0 : i32
    %c0_i32_0 = arith.constant 0 : i32
    return %arg0, %c0_i32, %arg1 : i32, i32, i32
  }
  func.func @transform_3(%arg0: i32, %arg1: i32) -> (i32, i32, i32) {
    %c0_i32 = arith.constant 0 : i32
    %c0_i32_0 = arith.constant 0 : i32
    return %arg0, %c0_i32, %arg1 : i32, i32, i32
  }
}

</mosaic_0001>

<bundles_post_ra>
// kernel: mresconv_forward.3
= control target key start
LH: loop header
LB: loop body
LE: loop exit
PB: predicated region body
PF: predicated region fallthrough
CT: control target
= control target key end

     0   :  { %s1131_s15 = smov 0   ;;  %s1133_s16 = smov 0   ;;  %s1359_s0 = inlined_call_operand.vmem [shape: bf16[2,80,1024], index: 0, kind: input, shape index: {}]   ;;  %s1360_s1 = inlined_call_operand.vmem [shape: bf16[32,80], index: 1, kind: input, shape index: {}]   ;;  %s1361_s2 = inlined_call_operand.vmem [shape: bf16[2,32,1024], index: 2, kind: output, shape index: {0}]   ;;  %s1362_s3 = inlined_call_operand.vmem [shape: f32[2,2,32,1], index: 3, kind: output, shape index: {1}]   ;;  %s1363_s4 = inlined_call_operand.vmem [shape: f32[2,2,32,1], index: 4, kind: output, shape index: {2}]  }
   0x1   :  { %s1135_s17 = smov 0   ;;  %s1137_s18 = smov 0  }
   0x2   :  { %s1139_s19 = smov 0   ;;  %s1141_s20 = smov 0  }
   0x3   :  { %s1143_s21 = smov 0  }
   0x4 LB: > { %s24_s22 = sadd.s32 1, %s1096_s19  ;;  %s27_s23 = sadd.s32 1, %s1100_s20  ;;  %s1104_s21 = sphi %s1143_s21, %s15_s21   ;;  %s1100_s20 = sphi %s1141_s20, %s1370_s20   ;;  %s1096_s19 = sphi %s1139_s19, %s1369_s19   ;;  %s1092_s18 = sphi %s1137_s18, %s1368_s18   ;;  %s1088_s17 = sphi %s1135_s17, %s1367_s17   ;;  %s1084_s16 = sphi %s1133_s16, %s1366_s16   ;;  %s1080_s15 = sphi %s1131_s15, %s1365_s15  }
   0x5   : > { %p25_p0 = scmp.ge.s32.totalorder %s24_s22, 2  ;;  %s853_s24 = sadd.s32 4294967295, %s1104_s21  }
   0x6   : > { %p43_p1 = scmp.ne.s32.totalorder %s1084_s16, %s1080_s15  ;;  %p44_p2 = scmp.eq.s32.totalorder %s1104_s21, 0 }
   0x7   : > { %s1372_s22 = smov (%p25_p0, %s24_s22), 0  ;;  %s1374_s23 = smov (!%p25_p0, %s27_s23), %s1100_s20 }
   0x8   : > { %p29_p3 = scmp.ge.s32.totalorder %s1374_s23, 2  ;;  %p96_p4 = scmp.eq.s32.totalorder %s853_s24, 3 }
   0x9   : > { %s32_s25 = ssub.s32 %s1096_s19, %s1372_s22  ;;  %p45_p5 = por %p44_p2, %p43_p1 }
   0xa   : > { %s1376_s23 = smov (%p29_p3, %s1374_s23), 0  ;;  %p1179_p6 = por %p96_p4, %p43_p1 }
   0xb   : > { %s31_s27 = ssub.s32 %s1100_s20, %s1376_s23  ;;  %s36_s29 = sadd.s32 1, %s1084_s16 }
   0xc   : > { %s33_s28 = sor.u32 %s32_s25, %s31_s27  ;;  %p856_p8 = scmp.ge.s32.totalorder %s1104_s21, 4 }
   0xd   : > { %p34_p7 = scmp.eq.s32.totalorder %s33_s28, 0 }
   0xe   : > { %177 = sbr.rel (%p856_p8) target bundleno = 47 (0x2f), region = 20 }
   0xf   : > { %s1187_s30 = scalar_select %p34_p7, %s1084_s16, %s36_s29  }
  0x13   : > { %180 = sbr.rel (!%p45_p5) target bundleno = 47 (0x2f), region = 24  ;;  %s182_s5 = sand.u32 (%p45_p5), 1, %s1084_s16  }
  0x14   : > { %s991_s6 = smul.u32 (%p45_p5), 160, %s182_s5  ;;  %s857_s7 = sshll.u32 (%p45_p5), %s1096_s19, 2 }
  0x15   : > { %s992_s8 = smul.u32 (%p45_p5), 80, %s1100_s20 }
  0x16   : > { %s1201_s14 = scalar_lea.vmem (%p45_p5), [#allocation2], %s991_s6 }
  0x17   : > { %s187_s9 = sadd.s32 (%p45_p5), %s992_s8, %s857_s7 }
  0x18   : > { %s858_s10 = sshll.u32 %s187_s9, 2 }
  0x19   : > { %s1196_s13 = scalar_lea.vmem %s1359_s0, %s858_s10 }
  0x1a   : > { %v202_v0 = vld [vmem:[%s1196_s13] sm:$0xff]  ;;  %v204_v1 = vld [vmem:[%s1196_s13 + $0x8] sm:$0xff] }
  0x1b   : > { %v206_v2 = vld [vmem:[%s1196_s13 + $0x20] sm:$0xff]  ;;  %203 = vst [vmem:[%s1201_s14] sm:$0xff] %v202_v0  ;;  %v208_v3 = vld [vmem:[%s1196_s13 + $0x28] sm:$0xff] }
  0x1c   : > { %205 = vst [vmem:[%s1201_s14 + $0x8] sm:$0xff] %v204_v1  ;;  %v210_v4 = vld [vmem:[%s1196_s13 + $0x40] sm:$0xff]  ;;  %v212_v5 = vld [vmem:[%s1196_s13 + $0x48] sm:$0xff] }
  0x1d   : > { %207 = vst [vmem:[%s1201_s14 + $0x10] sm:$0xff] %v206_v2  ;;  %v214_v6 = vld [vmem:[%s1196_s13 + $0x60] sm:$0xff]  ;;  %v216_v7 = vld [vmem:[%s1196_s13 + $0x68] sm:$0xff] }
  0x1e   : > { %209 = vst [vmem:[%s1201_s14 + $0x18] sm:$0xff] %v208_v3  ;;  %v218_v8 = vld [vmem:[%s1196_s13 + $0x80] sm:$0xff]  ;;  %v220_v9 = vld [vmem:[%s1196_s13 + $0x88] sm:$0xff] }
  0x1f   : > { %211 = vst [vmem:[%s1201_s14 + $0x20] sm:$0xff] %v210_v4  ;;  %v222_v10 = vld [vmem:[%s1196_s13 + $0xa0] sm:$0xff]  ;;  %v224_v11 = vld [vmem:[%s1196_s13 + $0xa8] sm:$0xff] }
  0x20   : > { %213 = vst [vmem:[%s1201_s14 + $0x28] sm:$0xff] %v212_v5  ;;  %v226_v12 = vld [vmem:[%s1196_s13 + $0xc0] sm:$0xff]  ;;  %v228_v13 = vld [vmem:[%s1196_s13 + $0xc8] sm:$0xff] }
  0x21   : > { %215 = vst [vmem:[%s1201_s14 + $0x30] sm:$0xff] %v214_v6  ;;  %v230_v14 = vld [vmem:[%s1196_s13 + $0xe0] sm:$0xff]  ;;  %v232_v15 = vld [vmem:[%s1196_s13 + $0xe8] sm:$0xff] }
  0x22   : > { %217 = vst [vmem:[%s1201_s14 + $0x38] sm:$0xff] %v216_v7  ;;  %v234_v16 = vld [vmem:[%s1196_s13 + $0x100] sm:$0xff]  ;;  %v236_v17 = vld [vmem:[%s1196_s13 + $0x108] sm:$0xff] }
  0x23   : > { %219 = vst [vmem:[%s1201_s14 + $0x40] sm:$0xff] %v218_v8  ;;  %v238_v18 = vld [vmem:[%s1196_s13 + $0x120] sm:$0xff]  ;;  %v240_v19 = vld [vmem:[%s1196_s13 + $0x128] sm:$0xff] }
  0x24   : > { %221 = vst [vmem:[%s1201_s14 + $0x48] sm:$0xff] %v220_v9 }
  0x25   : > { %223 = vst [vmem:[%s1201_s14 + $0x50] sm:$0xff] %v222_v10 }
  0x26   : > { %225 = vst [vmem:[%s1201_s14 + $0x58] sm:$0xff] %v224_v11 }
  0x27   : > { %227 = vst [vmem:[%s1201_s14 + $0x60] sm:$0xff] %v226_v12 }
  0x28   : > { %229 = vst [vmem:[%s1201_s14 + $0x68] sm:$0xff] %v228_v13 }
  0x29   : > { %231 = vst [vmem:[%s1201_s14 + $0x70] sm:$0xff] %v230_v14 }
  0x2a   : > { %233 = vst [vmem:[%s1201_s14 + $0x78] sm:$0xff] %v232_v15 }
  0x2b   : > { %235 = vst [vmem:[%s1201_s14 + $0x80] sm:$0xff] %v234_v16 }
  0x2c   : > { %237 = vst [vmem:[%s1201_s14 + $0x88] sm:$0xff] %v236_v17 }
  0x2d   : > { %239 = vst [vmem:[%s1201_s14 + $0x90] sm:$0xff] %v238_v18 }
  0x2e   : > { %241 = vst [vmem:[%s1201_s14 + $0x98] sm:$0xff] %v240_v19 }
  0x2f PF: > { %p859_p9 = scmp.ge.s32.totalorder %s1104_s21, 1  ;;  %p246_p10 = scmp.lt.s32.totalorder %s1104_s21, 5 }
  0x31   : > { %p247_p11 = pnand %p859_p9, %p246_p10 }
  0x32   : > { %s253_s24 = sand.u32 (!%p247_p11), 1, %s1080_s15   ;;  %p297_p12 = scmp.lt.s32.totalorder (!%p247_p11), %s1092_s18, 1 }
  0x33   : > { %250 = sbr.rel (%p247_p11) target bundleno = 366 (0x16e), region = 47  ;;  %s860_s7 = sshll.u32 (!%p247_p11), %s253_s24, 6 }
  0x34   : > { %s993_s25 = smul.u32 (!%p247_p11), 160, %s253_s24  ;;  %s1295_s8 = scalar_lea.vmem (!%p247_p11), [#allocation3], %s860_s7 }
  0x35   : > { %p299_p13 = scmp.lt.s32.totalorder (!%p247_p11), %s1088_s17, 1 }
  0x36   : > { %s1245_s27 = scalar_lea.vmem (!%p247_p11), [#allocation2], %s993_s25 }
  0x38   : > { %v941_v20 = vld [vmem:[%s1245_s27 + $0x80] sm:$0xf]  ;;  %v989_v21 = vld [vmem:[%s1245_s27 + $0x8c] sm:$0xf0]  ;;  %v987_v22 = vld [vmem:[%s1245_s27 + $0x84] sm:$0xf] }
  0x39   : > { %v942_v23 = vor.u32 %v989_v21, %v941_v20  ;;  %v943_v24 = vld [vmem:[%s1245_s27 + $0x90] sm:$0xf0]  ;;  %v949_v25 = vld [vmem:[%s1245_s27 + $0x88] sm:$0xf]  ;;  %v990_v26 = vld [vmem:[%s1245_s27 + $0x94] sm:$0xf0] }
  0x3a   : > { %v946_v27 = vor.u32 %v987_v22, %v943_v24  ;;  %v950_v28 = vor.u32 %v990_v26, %v949_v25  ;;  %v988_v29 = vld [vmem:[%s1245_s27 + $0x8c] sm:$0xf]  ;;  %v951_v30 = vld [vmem:[%s1245_s27 + $0x98] sm:$0xf0]  ;;  %v925_v31 = vld [vmem:[%s1245_s27 + $0x60] sm:$0xf] }
  0x3b   : > { %460 = vmatpush.bf16.msra.mxu0 %v942_v23  ;;  %v954_v32 = vor.u32 %v988_v29, %v951_v30  ;;  %v985_v33 = vld [vmem:[%s1245_s27 + $0x6c] sm:$0xf0]  ;;  %v983_v34 = vld [vmem:[%s1245_s27 + $0x64] sm:$0xf]  ;;  %v927_v35 = vld [vmem:[%s1245_s27 + $0x70] sm:$0xf0] }
  0x3c   : > { %479 = vmatpush.bf16.msra.mxu1 %v946_v27  ;;  %498 = vmatpush.bf16.msra.mxu2 %v950_v28  ;;  %v926_v36 = vor.u32 %v985_v33, %v925_v31  ;;  %v930_v37 = vor.u32 %v983_v34, %v927_v35  ;;  %v933_v38 = vld [vmem:[%s1245_s27 + $0x68] sm:$0xf]  ;;  %v986_v39 = vld [vmem:[%s1245_s27 + $0x74] sm:$0xf0]  ;;  %v984_v40 = vld [vmem:[%s1245_s27 + $0x6c] sm:$0xf] }
  0x3d   : > { %517 = vmatpush.bf16.msra.mxu3 %v954_v32  ;;  %v934_v41 = vor.u32 %v986_v39, %v933_v38  ;;  %v935_v42 = vld [vmem:[%s1245_s27 + $0x78] sm:$0xf0]  ;;  %v909_v43 = vld [vmem:[%s1245_s27 + $0x40] sm:$0xf]  ;;  %v981_v44 = vld [vmem:[%s1245_s27 + $0x4c] sm:$0xf0] }
  0x3e   : > { %v938_v45 = vor.u32 %v984_v40, %v935_v42  ;;  %v979_v46 = vld [vmem:[%s1245_s27 + $0x44] sm:$0xf]  ;;  %v911_v47 = vld [vmem:[%s1245_s27 + $0x50] sm:$0xf0]  ;;  %v917_v48 = vld [vmem:[%s1245_s27 + $0x48] sm:$0xf]  ;;  %v910_v49 = vor.u32 %v981_v44, %v909_v43 }
  0x3f   : > { %461 = vmatpush.bf16.msra.mxu0 %v926_v36  ;;  %v982_v50 = vld [vmem:[%s1245_s27 + $0x54] sm:$0xf0]  ;;  %v980_v51 = vld [vmem:[%s1245_s27 + $0x4c] sm:$0xf]  ;;  %v919_v52 = vld [vmem:[%s1245_s27 + $0x58] sm:$0xf0]  ;;  %v914_v53 = vor.u32 %v979_v46, %v911_v47 }
  0x40   : > { %480 = vmatpush.bf16.msra.mxu1 %v930_v37  ;;  %499 = vmatpush.bf16.msra.mxu2 %v934_v41  ;;  %v918_v54 = vor.u32 %v982_v50, %v917_v48  ;;  %v893_v55 = vld [vmem:[%s1245_s27 + $0x20] sm:$0xf]  ;;  %v977_v56 = vld [vmem:[%s1245_s27 + $0x2c] sm:$0xf0]  ;;  %v975_v57 = vld [vmem:[%s1245_s27 + $0x24] sm:$0xf]  ;;  %v922_v58 = vor.u32 %v980_v51, %v919_v52 }
  0x41   : > { %518 = vmatpush.bf16.msra.mxu3 %v938_v45  ;;  %v895_v59 = vld [vmem:[%s1245_s27 + $0x30] sm:$0xf0]  ;;  %v901_v60 = vld [vmem:[%s1245_s27 + $0x28] sm:$0xf]  ;;  %v978_v61 = vld [vmem:[%s1245_s27 + $0x34] sm:$0xf0]  ;;  %v894_v0 = vor.u32 %v977_v56, %v893_v55 }
  0x42   : > { %v976_v62 = vld [vmem:[%s1245_s27 + $0x2c] sm:$0xf]  ;;  %v903_v63 = vld [vmem:[%s1245_s27 + $0x38] sm:$0xf0]  ;;  %v898_v1 = vor.u32 %v975_v57, %v895_v59  ;;  %v902_v2 = vor.u32 %v978_v61, %v901_v60  ;;  %v877_v3 = vld [vmem:[%s1245_s27] sm:$0xf] }
  0x43   : > { %462 = vmatpush.bf16.msra.mxu0 %v910_v49  ;;  %v973_v4 = vld [vmem:[%s1245_s27 + $0xc] sm:$0xf0]  ;;  %v971_v5 = vld [vmem:[%s1245_s27 + $0x4] sm:$0xf]  ;;  %v906_v6 = vor.u32 %v976_v62, %v903_v63  ;;  %v879_v7 = vld [vmem:[%s1245_s27 + $0x10] sm:$0xf0] }
  0x44   : > { %481 = vmatpush.bf16.msra.mxu1 %v914_v53  ;;  %500 = vmatpush.bf16.msra.mxu2 %v918_v54  ;;  %v885_v8 = vld [vmem:[%s1245_s27 + $0x8] sm:$0xf]  ;;  %v974_v9 = vld [vmem:[%s1245_s27 + $0x14] sm:$0xf0]  ;;  %v972_v10 = vld [vmem:[%s1245_s27 + $0xc] sm:$0xf]  ;;  %v878_v12 = vor.u32 %v973_v4, %v877_v3  ;;  %v882_v13 = vor.u32 %v971_v5, %v879_v7 }
  0x45   : > { %519 = vmatpush.bf16.msra.mxu3 %v922_v58  ;;  %v887_v11 = vld [vmem:[%s1245_s27 + $0x18] sm:$0xf0]  ;;  %v886_v14 = vor.u32 %v974_v9, %v885_v8  ;;  %v969_v16 = vld [vmem:[%s1360_s1] sm:$0xff]  ;;  %vm450_vm0 = vcmask 654336   ;;  %v970_v17 = vld [vmem:[%s1360_s1 + $0x8] sm:$0xff]  ;;  %s298_s15 = scalar_select %p297_p12, %s1092_s18, 1 }
  0x46   : > { %v890_v15 = vor.u32 %v972_v10, %v887_v11  ;;  %s300_s9 = scalar_select %p299_p13, %s1088_s17, 1  ;;  %vm585_vm1 = vcmask 7168  }
  0x47   : > { %463 = vmatpush.bf16.msra.mxu0 %v894_v0  ;;  %s862_s11 = sshll.u32 %s298_s15, 3  ;;  %s964_s5 = sshll.u32 (%p1179_p6), %s1088_s17, 2 }
  0x48   : > { %482 = vmatpush.bf16.msra.mxu1 %v898_v1  ;;  %501 = vmatpush.bf16.msra.mxu2 %v902_v2  ;;  %s861_s10 = sshll.u32 %s300_s9, 2  ;;  %s965_s6 = sshll.u32 (%p1179_p6), %s1092_s18, 5 }
  0x49   : > { %520 = vmatpush.bf16.msra.mxu3 %v906_v6  ;;  %s303_s12 = sadd.s32 %s862_s11, %s861_s10  ;;  %s657_s7 = sadd.s32 (%p1179_p6), %s965_s6, %s964_s5 }
  0x4a   : > { %s863_s13 = sshll.u32 %s303_s12, 3  ;;  %s966_s15 = sshll.u32 (%p1179_p6), %s657_s7, 2 }
  0x4b   : > { %464 = vmatpush.bf16.msra.mxu0 %v878_v12  ;;  %s305_s25 = scalar_lea.vmem %s1362_s3, %s863_s13  ;;  %s314_s29 = scalar_lea.vmem %s1363_s4, %s863_s13 }
  0x4c   : > { %483 = vmatpush.bf16.msra.mxu1 %v882_v13  ;;  %502 = vmatpush.bf16.msra.mxu2 %v886_v14  ;;  %s659_s26 = scalar_lea.vmem (%p1179_p6), %s1361_s2, %s966_s15 }
  0x4d   : > { %521 = vmatpush.bf16.msra.mxu3 %v890_v15 }
  0x4e   : > { %955 = vmatmul.msk.bf16.vlgmr.msra.gmra.mxu0 %vm450_vm0, %v969_v16 }
  0x4f   : > { %957 = vmatmul.msk.bf16.vlgmr.msra.gmra.mxu1 %vm450_vm0, %v969_v16  ;;  %959 = vmatmul.msk.bf16.vlgmr.msra.gmra.mxu2 %vm450_vm0, %v969_v16 }
  0x50   : > { %961 = vmatmul.msk.bf16.vlgmr.msra.gmra.mxu3 %vm450_vm0, %v969_v16 }
  0x5e   : > { %956 = vmatmul.msk.bf16.gmra.mxu0 %vm450_vm0, %v970_v17 }
  0x5f   : > { %958 = vmatmul.msk.bf16.gmra.mxu1 %vm450_vm0, %v970_v17  ;;  %960 = vmatmul.msk.bf16.gmra.mxu2 %vm450_vm0, %v970_v17 }
  0x60   : > { %962 = vmatmul.msk.bf16.gmra.mxu3 %vm450_vm0, %v970_v17 }
  0xcb   : > { %v466_v18 = vpop.f32.mrf.mxu0 }
  0xcc   : > { %v533_v19 = vmax.f32 %v466_v18, 0.0  ;;  %v485_v20 = vpop.f32.mrf.mxu1 }
  0xcd   : > { %v534_v21 = vmax.f32 %v485_v20, 0.0  ;;  %v549_v22 = vpack.c.bf16 %v485_v20, %v466_v18 }
  0xce   : > { %v590_v23 = vmul.f32 %v533_v19, %v533_v19 }
  0xcf   : > { %557 = vst [vmem:[%s1295_s8] sm:$0xff] %v549_v22  ;;  %v591_v24 = vmul.f32 %v534_v21, %v534_v21  ;;  %v565_v25 = vadd.f32 %v534_v21, %v533_v19 }
  0xd1   : > { %v606_v30 = vadd.f32 %v591_v24, %v590_v23 }
  0xd2   : > { %v504_v26 = vpop.f32.mrf.mxu2 }
  0xd3   : > { %v535_v27 = vmax.f32 %v504_v26, 0.0  ;;  %v523_v28 = vpop.f32.mrf.mxu3  ;;  %v468_v29 = vpop.f32.mrf.mxu0 }
  0xd4   : > { %v536_v31 = vmax.f32 %v523_v28, 0.0  ;;  %v550_v32 = vpack.c.bf16 %v523_v28, %v504_v26  ;;  %v537_v33 = vmax.f32 %v468_v29, 0.0  ;;  %v487_v34 = vpop.f32.mrf.mxu1 }
  0xd5   : > { %v592_v35 = vmul.f32 %v535_v27, %v535_v27  ;;  %v538_v36 = vmax.f32 %v487_v34, 0.0  ;;  %v551_v37 = vpack.c.bf16 %v487_v34, %v468_v29  ;;  %v566_v38 = vadd.f32 %v565_v25, %v535_v27 }
  0xd6   : > { %558 = vst [vmem:[%s1295_s8 + $0x8] sm:$0xff] %v550_v32  ;;  %v593_v39 = vmul.f32 %v536_v31, %v536_v31  ;;  %v594_v42 = vmul.f32 %v537_v33, %v537_v33 }
  0xd7   : > { %559 = vst [vmem:[%s1295_s8 + $0x10] sm:$0xff] %v551_v37  ;;  %v567_v40 = vadd.f32 %v566_v38, %v536_v31  ;;  %v607_v41 = vadd.f32 %v606_v30, %v592_v35  ;;  %v595_v43 = vmul.f32 %v538_v36, %v538_v36  ;;  %v570_v46 = vadd.f32 %v538_v36, %v537_v33 }
  0xd9   : > { %568 = vadd.xlane.f32.xlu0 %v567_v40  ;;  %v608_v44 = vadd.f32 %v607_v41, %v593_v39  ;;  %v611_v54 = vadd.f32 %v595_v43, %v594_v42  ;;  %v672_v42 = vld [vmem:[%s1295_s8] sm:$0xff] (%p1179_p6) }
  0xda   : > { %v506_v45 = vpop.f32.mrf.mxu2  ;;  %673 = vst [vmem:[%s659_s26] sm:$0xff] (%p1179_p6), %v672_v42 }
  0xdb   : > { %v539_v47 = vmax.f32 %v506_v45, 0.0  ;;  %v525_v48 = vpop.f32.mrf.mxu3  ;;  %609 = vadd.xlane.f32.xlu2 %v608_v44  ;;  %v471_v49 = vpop.f32.mrf.mxu0 }
  0xdc   : > { %v540_v50 = vmax.f32 %v525_v48, 0.0  ;;  %v552_v51 = vpack.c.bf16 %v525_v48, %v506_v45  ;;  %v541_v52 = vmax.f32 %v471_v49, 0.0  ;;  %v490_v53 = vpop.f32.mrf.mxu1 }
  0xdd   : > { %v596_v55 = vmul.f32 %v539_v47, %v539_v47  ;;  %v542_v56 = vmax.f32 %v490_v53, 0.0  ;;  %v553_v57 = vpack.c.bf16 %v490_v53, %v471_v49  ;;  %v571_v58 = vadd.f32 %v570_v46, %v539_v47  ;;  %v674_v43 = vld [vmem:[%s1295_s8 + $0x8] sm:$0xff] (%p1179_p6) }
  0xde   : > { %560 = vst [vmem:[%s1295_s8 + $0x18] sm:$0xff] %v552_v51  ;;  %v598_v59 = vmul.f32 %v541_v52, %v541_v52  ;;  %v597_v62 = vmul.f32 %v540_v50, %v540_v50  ;;  %v676_v44 = vld [vmem:[%s1295_s8 + $0x10] sm:$0xff] (%p1179_p6) }
  0xdf   : > { %561 = vst [vmem:[%s1295_s8 + $0x20] sm:$0xff] %v553_v57  ;;  %v599_v60 = vmul.f32 %v542_v56, %v542_v56  ;;  %v572_v61 = vadd.f32 %v571_v58, %v540_v50  ;;  %v612_v63 = vadd.f32 %v611_v54, %v596_v55  ;;  %v575_v0 = vadd.f32 %v542_v56, %v541_v52 }
  0xe0   : > { %675 = vst [vmem:[%s659_s26 + $0x8] sm:$0xff] (%p1179_p6), %v674_v43 }
  0xe1   : > { %573 = vadd.xlane.f32.xlu0 %v572_v61  ;;  %v613_v1 = vadd.f32 %v612_v63, %v597_v62  ;;  %v616_v6 = vadd.f32 %v599_v60, %v598_v59  ;;  %677 = vst [vmem:[%s659_s26 + $0x20] sm:$0xff] (%p1179_p6), %v676_v44 }
  0xe2   : > { %v509_v2 = vpop.f32.mrf.mxu2 }
  0xe3   : > { %v543_v3 = vmax.f32 %v509_v2, 0.0  ;;  %v528_v4 = vpop.f32.mrf.mxu3  ;;  %614 = vadd.xlane.f32.xlu2 %v613_v1  ;;  %v473_v5 = vpop.f32.mrf.mxu0 }
  0xe4   : > { %v544_v7 = vmax.f32 %v528_v4, 0.0  ;;  %v554_v8 = vpack.c.bf16 %v528_v4, %v509_v2  ;;  %v492_v9 = vpop.f32.mrf.mxu1  ;;  %v545_v14 = vmax.f32 %v473_v5, 0.0 }
  0xe5   : > { %v600_v10 = vmul.f32 %v543_v3, %v543_v3  ;;  %v555_v11 = vpack.c.bf16 %v492_v9, %v473_v5  ;;  %v576_v12 = vadd.f32 %v575_v0, %v543_v3  ;;  %v546_v15 = vmax.f32 %v492_v9, 0.0  ;;  %v678_v45 = vld [vmem:[%s1295_s8 + $0x18] sm:$0xff] (%p1179_p6) }
  0xe6   : > { %562 = vst [vmem:[%s1295_s8 + $0x28] sm:$0xff] %v554_v8  ;;  %v601_v13 = vmul.f32 %v544_v7, %v544_v7  ;;  %v602_v24 = vmul.f32 %v545_v14, %v545_v14  ;;  %v680_v46 = vld [vmem:[%s1295_s8 + $0x20] sm:$0xff] (%p1179_p6) }
  0xe7   : > { %563 = vst [vmem:[%s1295_s8 + $0x30] sm:$0xff] %v555_v11  ;;  %v577_v16 = vadd.f32 %v576_v12, %v544_v7  ;;  %v617_v17 = vadd.f32 %v616_v6, %v600_v10  ;;  %v580_v20 = vadd.f32 %v546_v15, %v545_v14  ;;  %v603_v25 = vmul.f32 %v546_v15, %v546_v15 }
  0xe8   : > { %679 = vst [vmem:[%s659_s26 + $0x28] sm:$0xff] (%p1179_p6), %v678_v45 }
  0xe9   : > { %578 = vadd.xlane.f32.xlu1 %v577_v16  ;;  %v618_v18 = vadd.f32 %v617_v17, %v601_v13  ;;  %v621_v30 = vadd.f32 %v603_v25, %v602_v24  ;;  %681 = vst [vmem:[%s659_s26 + $0x40] sm:$0xff] (%p1179_p6), %v680_v46 }
  0xea   : > { %v511_v19 = vpop.f32.mrf.mxu2 }
  0xeb   : > { %v547_v21 = vmax.f32 %v511_v19, 0.0  ;;  %v530_v22 = vpop.f32.mrf.mxu3  ;;  %619 = vadd.xlane.f32.xlu0 %v618_v18 }
  0xec   : > { %v556_v23 = vpack.c.bf16 %v530_v22, %v511_v19  ;;  %v548_v27 = vmax.f32 %v530_v22, 0.0 }
  0xed   : > { %v581_v26 = vadd.f32 %v580_v20, %v547_v21  ;;  %v604_v28 = vmul.f32 %v547_v21, %v547_v21  ;;  %v682_v47 = vld [vmem:[%s1295_s8 + $0x28] sm:$0xff] (%p1179_p6) }
  0xee   : > { %564 = vst [vmem:[%s1295_s8 + $0x38] sm:$0xff] %v556_v23  ;;  %v605_v32 = vmul.f32 %v548_v27, %v548_v27  ;;  %v684_v48 = vld [vmem:[%s1295_s8 + $0x30] sm:$0xff] (%p1179_p6) }
  0xef   : > { %v582_v29 = vadd.f32 %v581_v26, %v548_v27  ;;  %v622_v31 = vadd.f32 %v621_v30, %v604_v28  ;;  %683 = vst [vmem:[%s659_s26 + $0x48] sm:$0xff] (%p1179_p6), %v682_v47 }
  0xf0   : > { %685 = vst [vmem:[%s659_s26 + $0x60] sm:$0xff] (%p1179_p6), %v684_v48 }
  0xf1   : > { %583 = vadd.xlane.f32.xlu1 %v582_v29  ;;  %v623_v33 = vadd.f32 %v622_v31, %v605_v32 }
  0xf5   : > { %v686_v49 = vld [vmem:[%s1295_s8 + $0x38] sm:$0xff] (%p1179_p6) }
  0xf6   : > { %687 = vst [vmem:[%s659_s26 + $0x68] sm:$0xff] (%p1179_p6), %v686_v49 }
  0xf9   : > { %624 = vadd.xlane.f32.xlu1 %v623_v33 }
 0x14c   : > { %v569_v34 = vpop.xlane.xlu0 %568 }
 0x14d   : > { %586 = vst.msk [vmem:[%s305_s25] sm:$0xff] %vm585_vm1, %v569_v34 }
 0x14e   : > { %v610_v35 = vpop.xlane.xlu2 %609 }
 0x14f   : > { %626 = vst.msk [vmem:[%s314_s29] sm:$0xff] %vm585_vm1, %v610_v35 }
 0x154   : > { %v574_v36 = vpop.xlane.xlu0 %573 }
 0x155   : > { %587 = vst.msk [vmem:[%s305_s25 + $0x8] sm:$0xff] %vm585_vm1, %v574_v36 }
 0x156   : > { %v615_v37 = vpop.xlane.xlu2 %614 }
 0x157   : > { %627 = vst.msk [vmem:[%s314_s29 + $0x8] sm:$0xff] %vm585_vm1, %v615_v37 }
 0x15c   : > { %v579_v38 = vpop.xlane.xlu1 %578 }
 0x15d   : > { %588 = vst.msk [vmem:[%s305_s25 + $0x10] sm:$0xff] %vm585_vm1, %v579_v38 }
 0x15e   : > { %v620_v39 = vpop.xlane.xlu0 %619 }
 0x15f   : > { %628 = vst.msk [vmem:[%s314_s29 + $0x10] sm:$0xff] %vm585_vm1, %v620_v39 }
 0x164   : > { %v584_v40 = vpop.xlane.xlu1 %583 }
 0x165   : > { %589 = vst.msk [vmem:[%s305_s25 + $0x18] sm:$0xff] %vm585_vm1, %v584_v40 }
 0x169   : > { %654 = sbr.rel (!%p1179_p6) target bundleno = 366 (0x16e), region = 55 }
 0x16c   : > { %v625_v41 = vpop.xlane.xlu1 %624 }
 0x16d   : > { %629 = vst.msk [vmem:[%s314_s29 + $0x18] sm:$0xff] %vm585_vm1, %v625_v41 }
 0x16e PF: > { %s15_s21 = sadd.s32 1, %s1104_s21   ;;  %s1365_s15 = smov %s1084_s16 }
 0x16f   : > { %p12_p0 = scmp.ge.s32.totalorder %s15_s21, 6   ;;  %s1366_s16 = smov %s1187_s30 }
 0x170   : > { %s1367_s17 = smov %s1096_s19  ;;  %s1368_s18 = smov %s1100_s20 }
 0x171   : > { %s1369_s19 = smov %s1372_s22  ;;  %s1370_s20 = smov %s1376_s23 }
 0x172   :  { %14 = sbr.rel (!%p12_p0) target bundleno = 4 (0x4), region = 133 }

// kernel: mresconv_forward.4
= control target key start
LH: loop header
LB: loop body
LE: loop exit
PB: predicated region body
PF: predicated region fallthrough
CT: control target
= control target key end

     0   :  { %s1495_s15 = smov 0   ;;  %s1497_s16 = smov 0   ;;  %s1859_s0 = inlined_call_operand.vmem [shape: bf16[2,160,1024], index: 0, kind: input, shape index: {}]   ;;  %s1860_s1 = inlined_call_operand.vmem [shape: bf16[32,160], index: 1, kind: input, shape index: {}]   ;;  %s1861_s2 = inlined_call_operand.vmem [shape: bf16[2,32,1024], index: 2, kind: output, shape index: {0}]   ;;  %s1862_s3 = inlined_call_operand.vmem [shape: f32[2,2,32,1], index: 3, kind: output, shape index: {1}]   ;;  %s1863_s4 = inlined_call_operand.vmem [shape: f32[2,2,32,1], index: 4, kind: output, shape index: {2}]  }
   0x1   :  { %s1499_s17 = smov 0   ;;  %s1501_s18 = smov 0  }
   0x2   :  { %s1503_s19 = smov 0   ;;  %s1505_s20 = smov 0  }
   0x3   :  { %s1507_s21 = smov 0  }
   0x4 LB: > { %s24_s22 = sadd.s32 1, %s1460_s19  ;;  %s27_s23 = sadd.s32 1, %s1464_s20  ;;  %s1468_s21 = sphi %s1507_s21, %s15_s21   ;;  %s1464_s20 = sphi %s1505_s20, %s1870_s20   ;;  %s1460_s19 = sphi %s1503_s19, %s1869_s19   ;;  %s1456_s18 = sphi %s1501_s18, %s1868_s18   ;;  %s1452_s17 = sphi %s1499_s17, %s1867_s17   ;;  %s1448_s16 = sphi %s1497_s16, %s1866_s16   ;;  %s1444_s15 = sphi %s1495_s15, %s1865_s15  }
   0x5   : > { %p25_p0 = scmp.ge.s32.totalorder %s24_s22, 2  ;;  %s1097_s24 = sadd.s32 4294967295, %s1468_s21  }
   0x6   : > { %p43_p1 = scmp.ne.s32.totalorder %s1448_s16, %s1444_s15  ;;  %p44_p2 = scmp.eq.s32.totalorder %s1468_s21, 0 }
   0x7   : > { %s1872_s22 = smov (%p25_p0, %s24_s22), 0  ;;  %s1874_s23 = smov (!%p25_p0, %s27_s23), %s1464_s20 }
   0x8   : > { %p29_p3 = scmp.ge.s32.totalorder %s1874_s23, 2  ;;  %p96_p4 = scmp.eq.s32.totalorder %s1097_s24, 3 }
   0x9   : > { %s32_s25 = ssub.s32 %s1460_s19, %s1872_s22  ;;  %p45_p5 = por %p44_p2, %p43_p1 }
   0xa   : > { %s1876_s23 = smov (%p29_p3, %s1874_s23), 0  ;;  %p1543_p6 = por %p96_p4, %p43_p1 }
   0xb   : > { %s31_s27 = ssub.s32 %s1464_s20, %s1876_s23  ;;  %s36_s29 = sadd.s32 1, %s1448_s16 }
   0xc   : > { %s33_s28 = sor.u32 %s32_s25, %s31_s27  ;;  %p1100_p8 = scmp.ge.s32.totalorder %s1468_s21, 4 }
   0xd   : > { %p34_p7 = scmp.eq.s32.totalorder %s33_s28, 0 }
   0xe   : > { %177 = sbr.rel (%p1100_p8) target bundleno = 67 (0x43), region = 20 }
   0xf   : > { %s1551_s30 = scalar_select %p34_p7, %s1448_s16, %s36_s29  }
  0x13   : > { %180 = sbr.rel (!%p45_p5) target bundleno = 67 (0x43), region = 24  ;;  %s182_s5 = sand.u32 (%p45_p5), 1, %s1448_s16  }
  0x14   : > { %s1355_s6 = smul.u32 (%p45_p5), 320, %s182_s5  ;;  %s1101_s7 = sshll.u32 (%p45_p5), %s1460_s19, 2 }
  0x15   : > { %s1356_s8 = smul.u32 (%p45_p5), 160, %s1464_s20 }
  0x16   : > { %s1565_s14 = scalar_lea.vmem (%p45_p5), [#allocation2], %s1355_s6 }
  0x17   : > { %s187_s9 = sadd.s32 (%p45_p5), %s1356_s8, %s1101_s7 }
  0x18   : > { %s1102_s10 = sshll.u32 %s187_s9, 2 }
  0x19   : > { %s1560_s13 = scalar_lea.vmem %s1859_s0, %s1102_s10 }
  0x1a   : > { %v202_v0 = vld [vmem:[%s1560_s13] sm:$0xff]  ;;  %v204_v1 = vld [vmem:[%s1560_s13 + $0x8] sm:$0xff] }
  0x1b   : > { %v206_v2 = vld [vmem:[%s1560_s13 + $0x20] sm:$0xff]  ;;  %203 = vst [vmem:[%s1565_s14] sm:$0xff] %v202_v0  ;;  %v208_v3 = vld [vmem:[%s1560_s13 + $0x28] sm:$0xff] }
  0x1c   : > { %205 = vst [vmem:[%s1565_s14 + $0x8] sm:$0xff] %v204_v1  ;;  %v210_v4 = vld [vmem:[%s1560_s13 + $0x40] sm:$0xff]  ;;  %v212_v5 = vld [vmem:[%s1560_s13 + $0x48] sm:$0xff] }
  0x1d   : > { %207 = vst [vmem:[%s1565_s14 + $0x10] sm:$0xff] %v206_v2  ;;  %v214_v6 = vld [vmem:[%s1560_s13 + $0x60] sm:$0xff]  ;;  %v216_v7 = vld [vmem:[%s1560_s13 + $0x68] sm:$0xff] }
  0x1e   : > { %209 = vst [vmem:[%s1565_s14 + $0x18] sm:$0xff] %v208_v3  ;;  %v218_v8 = vld [vmem:[%s1560_s13 + $0x80] sm:$0xff]  ;;  %v220_v9 = vld [vmem:[%s1560_s13 + $0x88] sm:$0xff] }
  0x1f   : > { %211 = vst [vmem:[%s1565_s14 + $0x20] sm:$0xff] %v210_v4  ;;  %v222_v10 = vld [vmem:[%s1560_s13 + $0xa0] sm:$0xff]  ;;  %v224_v11 = vld [vmem:[%s1560_s13 + $0xa8] sm:$0xff] }
  0x20   : > { %213 = vst [vmem:[%s1565_s14 + $0x28] sm:$0xff] %v212_v5  ;;  %v226_v12 = vld [vmem:[%s1560_s13 + $0xc0] sm:$0xff]  ;;  %v228_v13 = vld [vmem:[%s1560_s13 + $0xc8] sm:$0xff] }
  0x21   : > { %215 = vst [vmem:[%s1565_s14 + $0x30] sm:$0xff] %v214_v6  ;;  %v230_v14 = vld [vmem:[%s1560_s13 + $0xe0] sm:$0xff]  ;;  %v232_v15 = vld [vmem:[%s1560_s13 + $0xe8] sm:$0xff] }
  0x22   : > { %217 = vst [vmem:[%s1565_s14 + $0x38] sm:$0xff] %v216_v7  ;;  %v234_v16 = vld [vmem:[%s1560_s13 + $0x100] sm:$0xff]  ;;  %v236_v17 = vld [vmem:[%s1560_s13 + $0x108] sm:$0xff] }
  0x23   : > { %219 = vst [vmem:[%s1565_s14 + $0x40] sm:$0xff] %v218_v8  ;;  %v238_v18 = vld [vmem:[%s1560_s13 + $0x120] sm:$0xff]  ;;  %v240_v19 = vld [vmem:[%s1560_s13 + $0x128] sm:$0xff] }
  0x24   : > { %221 = vst [vmem:[%s1565_s14 + $0x48] sm:$0xff] %v220_v9  ;;  %v242_v20 = vld [vmem:[%s1560_s13 + $0x140] sm:$0xff]  ;;  %v244_v21 = vld [vmem:[%s1560_s13 + $0x148] sm:$0xff] }
  0x25   : > { %223 = vst [vmem:[%s1565_s14 + $0x50] sm:$0xff] %v222_v10  ;;  %v246_v22 = vld [vmem:[%s1560_s13 + $0x160] sm:$0xff]  ;;  %v248_v23 = vld [vmem:[%s1560_s13 + $0x168] sm:$0xff] }
  0x26   : > { %225 = vst [vmem:[%s1565_s14 + $0x58] sm:$0xff] %v224_v11  ;;  %v250_v24 = vld [vmem:[%s1560_s13 + $0x180] sm:$0xff]  ;;  %v252_v25 = vld [vmem:[%s1560_s13 + $0x188] sm:$0xff] }
  0x27   : > { %227 = vst [vmem:[%s1565_s14 + $0x60] sm:$0xff] %v226_v12  ;;  %v254_v26 = vld [vmem:[%s1560_s13 + $0x1a0] sm:$0xff]  ;;  %v256_v27 = vld [vmem:[%s1560_s13 + $0x1a8] sm:$0xff] }
  0x28   : > { %229 = vst [vmem:[%s1565_s14 + $0x68] sm:$0xff] %v228_v13  ;;  %v258_v28 = vld [vmem:[%s1560_s13 + $0x1c0] sm:$0xff]  ;;  %v260_v29 = vld [vmem:[%s1560_s13 + $0x1c8] sm:$0xff] }
  0x29   : > { %231 = vst [vmem:[%s1565_s14 + $0x70] sm:$0xff] %v230_v14  ;;  %v262_v30 = vld [vmem:[%s1560_s13 + $0x1e0] sm:$0xff]  ;;  %v264_v31 = vld [vmem:[%s1560_s13 + $0x1e8] sm:$0xff] }
  0x2a   : > { %233 = vst [vmem:[%s1565_s14 + $0x78] sm:$0xff] %v232_v15  ;;  %v266_v32 = vld [vmem:[%s1560_s13 + $0x200] sm:$0xff]  ;;  %v268_v33 = vld [vmem:[%s1560_s13 + $0x208] sm:$0xff] }
  0x2b   : > { %235 = vst [vmem:[%s1565_s14 + $0x80] sm:$0xff] %v234_v16  ;;  %v270_v34 = vld [vmem:[%s1560_s13 + $0x220] sm:$0xff]  ;;  %v272_v35 = vld [vmem:[%s1560_s13 + $0x228] sm:$0xff] }
  0x2c   : > { %237 = vst [vmem:[%s1565_s14 + $0x88] sm:$0xff] %v236_v17  ;;  %v274_v36 = vld [vmem:[%s1560_s13 + $0x240] sm:$0xff]  ;;  %v276_v37 = vld [vmem:[%s1560_s13 + $0x248] sm:$0xff] }
  0x2d   : > { %239 = vst [vmem:[%s1565_s14 + $0x90] sm:$0xff] %v238_v18  ;;  %v278_v38 = vld [vmem:[%s1560_s13 + $0x260] sm:$0xff]  ;;  %v280_v39 = vld [vmem:[%s1560_s13 + $0x268] sm:$0xff] }
  0x2e   : > { %241 = vst [vmem:[%s1565_s14 + $0x98] sm:$0xff] %v240_v19 }
  0x2f   : > { %243 = vst [vmem:[%s1565_s14 + $0xa0] sm:$0xff] %v242_v20 }
  0x30   : > { %245 = vst [vmem:[%s1565_s14 + $0xa8] sm:$0xff] %v244_v21 }
  0x31   : > { %247 = vst [vmem:[%s1565_s14 + $0xb0] sm:$0xff] %v246_v22 }
  0x32   : > { %249 = vst [vmem:[%s1565_s14 + $0xb8] sm:$0xff] %v248_v23 }
  0x33   : > { %251 = vst [vmem:[%s1565_s14 + $0xc0] sm:$0xff] %v250_v24 }
  0x34   : > { %253 = vst [vmem:[%s1565_s14 + $0xc8] sm:$0xff] %v252_v25 }
  0x35   : > { %255 = vst [vmem:[%s1565_s14 + $0xd0] sm:$0xff] %v254_v26 }
  0x36   : > { %257 = vst [vmem:[%s1565_s14 + $0xd8] sm:$0xff] %v256_v27 }
  0x37   : > { %259 = vst [vmem:[%s1565_s14 + $0xe0] sm:$0xff] %v258_v28 }
  0x38   : > { %261 = vst [vmem:[%s1565_s14 + $0xe8] sm:$0xff] %v260_v29 }
  0x39   : > { %263 = vst [vmem:[%s1565_s14 + $0xf0] sm:$0xff] %v262_v30 }
  0x3a   : > { %265 = vst [vmem:[%s1565_s14 + $0xf8] sm:$0xff] %v264_v31 }
  0x3b   : > { %267 = vst [vmem:[%s1565_s14 + $0x100] sm:$0xff] %v266_v32 }
  0x3c   : > { %269 = vst [vmem:[%s1565_s14 + $0x108] sm:$0xff] %v268_v33 }
  0x3d   : > { %271 = vst [vmem:[%s1565_s14 + $0x110] sm:$0xff] %v270_v34 }
  0x3e   : > { %273 = vst [vmem:[%s1565_s14 + $0x118] sm:$0xff] %v272_v35 }
  0x3f   : > { %275 = vst [vmem:[%s1565_s14 + $0x120] sm:$0xff] %v274_v36 }
  0x40   : > { %277 = vst [vmem:[%s1565_s14 + $0x128] sm:$0xff] %v276_v37 }
  0x41   : > { %279 = vst [vmem:[%s1565_s14 + $0x130] sm:$0xff] %v278_v38 }
  0x42   : > { %281 = vst [vmem:[%s1565_s14 + $0x138] sm:$0xff] %v280_v39 }
  0x43 PF: > { %p1103_p9 = scmp.ge.s32.totalorder %s1468_s21, 1  ;;  %p286_p10 = scmp.lt.s32.totalorder %s1468_s21, 5 }
  0x45   : > { %p287_p11 = pnand %p1103_p9, %p286_p10 }
  0x46   : > { %s293_s24 = sand.u32 (!%p287_p11), 1, %s1444_s15   ;;  %p337_p12 = scmp.lt.s32.totalorder (!%p287_p11), %s1456_s18, 1 }
  0x47   : > { %290 = sbr.rel (%p287_p11) target bundleno = 424 (0x1a8), region = 47  ;;  %p339_p13 = scmp.lt.s32.totalorder (!%p287_p11), %s1452_s17, 1 }
  0x48   : > { %s1357_s25 = smul.u32 (!%p287_p11), 320, %s293_s24 }
  0x4a   : > { %s1649_s27 = scalar_lea.vmem (!%p287_p11), [#allocation2], %s1357_s25 }
  0x4c   : > { %v1241_v40 = vld [vmem:[%s1649_s27 + $0xe0] sm:$0xf]  ;;  %v1335_v41 = vld [vmem:[%s1649_s27 + $0xec] sm:$0xf0]  ;;  %vm618_vm0 = vcmask 261120   ;;  %s338_s15 = scalar_select %p337_p12, %s1456_s18, 1 }
  0x4d   : > { %v1273_v42 = vld [vmem:[%s1649_s27 + $0x120] sm:$0xf]  ;;  %v1242_v43 = vor.u32 %v1335_v41, %v1241_v40  ;;  %v1343_v44 = vld [vmem:[%s1649_s27 + $0x12c] sm:$0xf0]  ;;  %v1333_v45 = vld [vmem:[%s1649_s27 + $0xe4] sm:$0xf] }
  0x4e   : > { %v1243_v46 = vld [vmem:[%s1649_s27 + $0xf0] sm:$0xf0]  ;;  %v1274_v47 = vor.u32 %v1343_v44, %v1273_v42  ;;  %v1341_v49 = vld [vmem:[%s1649_s27 + $0x124] sm:$0xf]  ;;  %v1225_v51 = vld [vmem:[%s1649_s27 + $0xc0] sm:$0xf] }
  0x4f   : > { %v1246_v48 = vor.u32 %v1333_v45, %v1243_v46  ;;  %v1275_v50 = vld [vmem:[%s1649_s27 + $0x130] sm:$0xf0]  ;;  %v1301_v52 = vld [vmem:[%s1860_s1 + $0x4] sm:$0xf]  ;;  %v1115_v53 = vld [vmem:[%s1860_s1 + $0x8] sm:$0xf0]  ;;  %625 = vmatpush.bf16.msra.mxu0 %v1242_v43 }
  0x50   : > { %v1278_v54 = vor.u32 %v1341_v49, %v1275_v50  ;;  %v1331_v55 = vld [vmem:[%s1649_s27 + $0xcc] sm:$0xf0]  ;;  %v1257_v56 = vld [vmem:[%s1649_s27 + $0x100] sm:$0xf]  ;;  %650 = vmatpush.bf16.msra.mxu1 %v1274_v47  ;;  %v1329_v60 = vld [vmem:[%s1649_s27 + $0xc4] sm:$0xf]  ;;  %v1678_v8 = vor.u32 %v1301_v52, %v1115_v53 }
  0x51   : > { %v1339_v57 = vld [vmem:[%s1649_s27 + $0x10c] sm:$0xf0]  ;;  %663 = vmatpush.bf16.msra.mxu2 %v1246_v48  ;;  %v1226_v58 = vor.u32 %v1331_v55, %v1225_v51  ;;  %v1227_v61 = vld [vmem:[%s1649_s27 + $0xd0] sm:$0xf0]  ;;  %v1337_v62 = vld [vmem:[%s1649_s27 + $0x104] sm:$0xf] }
  0x52   : > { %v1258_v59 = vor.u32 %v1339_v57, %v1257_v56  ;;  %688 = vmatpush.bf16.msra.mxu3 %v1278_v54  ;;  %v1230_v63 = vor.u32 %v1329_v60, %v1227_v61  ;;  %v1259_v0 = vld [vmem:[%s1649_s27 + $0x110] sm:$0xf0]  ;;  %v1281_v1 = vld [vmem:[%s1649_s27 + $0x128] sm:$0xf]  ;;  %v1344_v2 = vld [vmem:[%s1649_s27 + $0x134] sm:$0xf0] }
  0x53   : > { %v1262_v3 = vor.u32 %v1337_v62, %v1259_v0  ;;  %v1282_v4 = vor.u32 %v1344_v2, %v1281_v1  ;;  %v1209_v5 = vld [vmem:[%s1649_s27 + $0xa0] sm:$0xf]  ;;  %v1327_v6 = vld [vmem:[%s1649_s27 + $0xac] sm:$0xf0]  ;;  %v1325_v7 = vld [vmem:[%s1649_s27 + $0xa4] sm:$0xf]  ;;  %626 = vmatpush.bf16.msra.mxu0 %v1226_v58 }
  0x54   : > { %v1210_v9 = vor.u32 %v1327_v6, %v1209_v5  ;;  %v1211_v10 = vld [vmem:[%s1649_s27 + $0xb0] sm:$0xf0]  ;;  %v1249_v11 = vld [vmem:[%s1649_s27 + $0xe8] sm:$0xf]  ;;  %v1336_v12 = vld [vmem:[%s1649_s27 + $0xf4] sm:$0xf0]  ;;  %651 = vmatpush.bf16.msra.mxu1 %v1258_v59 }
  0x55   : > { %664 = vmatpush.bf16.msra.mxu2 %v1230_v63  ;;  %v1214_v13 = vor.u32 %v1325_v7, %v1211_v10  ;;  %v1250_v14 = vor.u32 %v1336_v12, %v1249_v11  ;;  %v1193_v15 = vld [vmem:[%s1649_s27 + $0x80] sm:$0xf]  ;;  %v1323_v16 = vld [vmem:[%s1649_s27 + $0x8c] sm:$0xf0]  ;;  %v1321_v17 = vld [vmem:[%s1649_s27 + $0x84] sm:$0xf] }
  0x56   : > { %689 = vmatpush.bf16.msra.mxu3 %v1262_v3  ;;  %v1195_v18 = vld [vmem:[%s1649_s27 + $0x90] sm:$0xf0]  ;;  %v1233_v19 = vld [vmem:[%s1649_s27 + $0xc8] sm:$0xf]  ;;  %v1332_v20 = vld [vmem:[%s1649_s27 + $0xd4] sm:$0xf0]  ;;  %v1194_v22 = vor.u32 %v1323_v16, %v1193_v15 }
  0x57   : > { %v1234_v21 = vor.u32 %v1332_v20, %v1233_v19  ;;  %1287 = vmatmul.msk.bf16.vlgmr.msra.gmra.mxu1 %vm618_vm0, %v1678_v8  ;;  %627 = vmatpush.bf16.msra.mxu0 %v1210_v9  ;;  %v1217_v23 = vld [vmem:[%s1649_s27 + $0xa8] sm:$0xf]  ;;  %v1328_v24 = vld [vmem:[%s1649_s27 + $0xb4] sm:$0xf0]  ;;  %v1198_v25 = vor.u32 %v1321_v17, %v1195_v18  ;;  %v1177_v26 = vld [vmem:[%s1649_s27 + $0x60] sm:$0xf] }
  0x58   : > { %701 = vmatpush.bf16.msrb.mxu1 %v1250_v14  ;;  %v1319_v27 = vld [vmem:[%s1649_s27 + $0x6c] sm:$0xf0]  ;;  %v1317_v28 = vld [vmem:[%s1649_s27 + $0x64] sm:$0xf]  ;;  %v1179_v29 = vld [vmem:[%s1649_s27 + $0x70] sm:$0xf0]  ;;  %v1218_v30 = vor.u32 %v1328_v24, %v1217_v23 }
  0x59   : > { %1289 = vmatmul.msk.bf16.vlgmr.msra.gmra.mxu3 %vm618_vm0, %v1678_v8  ;;  %665 = vmatpush.bf16.msra.mxu2 %v1214_v13  ;;  %v1265_v31 = vld [vmem:[%s1649_s27 + $0x108] sm:$0xf]  ;;  %v1340_v32 = vld [vmem:[%s1649_s27 + $0x114] sm:$0xf0]  ;;  %v1178_v33 = vor.u32 %v1319_v27, %v1177_v26  ;;  %v1182_v37 = vor.u32 %v1317_v28, %v1179_v29  ;;  %v1161_v38 = vld [vmem:[%s1649_s27 + $0x40] sm:$0xf] }
  0x5a   : > { %726 = vmatpush.bf16.msrb.mxu3 %v1282_v4  ;;  %v1201_v34 = vld [vmem:[%s1649_s27 + $0x88] sm:$0xf]  ;;  %v1324_v35 = vld [vmem:[%s1649_s27 + $0x94] sm:$0xf0]  ;;  %v1266_v36 = vor.u32 %v1340_v32, %v1265_v31  ;;  %v1315_v39 = vld [vmem:[%s1649_s27 + $0x4c] sm:$0xf0] }
  0x5b   : > { %628 = vmatpush.bf16.msra.mxu0 %v1194_v22  ;;  %v1313_v40 = vld [vmem:[%s1649_s27 + $0x44] sm:$0xf]  ;;  %v1163_v41 = vld [vmem:[%s1649_s27 + $0x50] sm:$0xf0]  ;;  %v1202_v42 = vor.u32 %v1324_v35, %v1201_v34  ;;  %v1162_v44 = vor.u32 %v1315_v39, %v1161_v38  ;;  %v1123_v45 = vld [vmem:[%s1860_s1 + $0x18] sm:$0xf0] }
  0x5c   : > { %702 = vmatpush.bf16.msrb.mxu1 %v1234_v21  ;;  %v1303_v43 = vld [vmem:[%s1860_s1 + $0x14] sm:$0xf]  ;;  %v1185_v46 = vld [vmem:[%s1649_s27 + $0x68] sm:$0xf]  ;;  %v1320_v47 = vld [vmem:[%s1649_s27 + $0x74] sm:$0xf0]  ;;  %v1166_v48 = vor.u32 %v1313_v40, %v1163_v41 }
  0x5d   : > { %666 = vmatpush.bf16.msra.mxu2 %v1198_v25  ;;  %v1145_v49 = vld [vmem:[%s1649_s27 + $0x20] sm:$0xf]  ;;  %v1311_v50 = vld [vmem:[%s1649_s27 + $0x2c] sm:$0xf0]  ;;  %v1309_v51 = vld [vmem:[%s1649_s27 + $0x24] sm:$0xf]  ;;  %v1186_v55 = vor.u32 %v1320_v47, %v1185_v46  ;;  %v1721_v57 = vor.u32 %v1303_v43, %v1123_v45 }
  0x5e   : > { %727 = vmatpush.bf16.msrb.mxu3 %v1266_v36  ;;  %v1147_v52 = vld [vmem:[%s1649_s27 + $0x30] sm:$0xf0]  ;;  %v1342_v53 = vld [vmem:[%s1649_s27 + $0x12c] sm:$0xf]  ;;  %v1283_v54 = vld [vmem:[%s1649_s27 + $0x138] sm:$0xf0]  ;;  %v1146_v58 = vor.u32 %v1311_v50, %v1145_v49 }
  0x5f   : > { %629 = vmatpush.bf16.msra.mxu0 %v1178_v33  ;;  %v1286_v56 = vor.u32 %v1342_v53, %v1283_v54  ;;  %v1169_v59 = vld [vmem:[%s1649_s27 + $0x48] sm:$0xf]  ;;  %v1316_v60 = vld [vmem:[%s1649_s27 + $0x54] sm:$0xf0]  ;;  %v1150_v61 = vor.u32 %v1309_v51, %v1147_v52  ;;  %v1129_v62 = vld [vmem:[%s1649_s27] sm:$0xf] }
  0x60   : > { %703 = vmatpush.bf16.msrb.mxu1 %v1218_v30  ;;  %v1307_v63 = vld [vmem:[%s1649_s27 + $0xc] sm:$0xf0]  ;;  %v1305_v0 = vld [vmem:[%s1649_s27 + $0x4] sm:$0xf]  ;;  %v1131_v1 = vld [vmem:[%s1649_s27 + $0x10] sm:$0xf0]  ;;  %v1170_v4 = vor.u32 %v1316_v60, %v1169_v59 }
  0x61   : > { %667 = vmatpush.bf16.msra.mxu2 %v1182_v37  ;;  %v1334_v2 = vld [vmem:[%s1649_s27 + $0xec] sm:$0xf]  ;;  %v1251_v3 = vld [vmem:[%s1649_s27 + $0xf8] sm:$0xf0]  ;;  %v1113_v5 = vld [vmem:[%s1860_s1] sm:$0xf]  ;;  %v1130_v6 = vor.u32 %v1307_v63, %v1129_v62  ;;  %v1134_v11 = vor.u32 %v1305_v0, %v1131_v1 }
  0x62   : > { %1353 = vmatpush.bf16.msra.mxu3 %v1286_v56  ;;  %v1302_v7 = vld [vmem:[%s1860_s1 + $0x4] sm:$0xf0]  ;;  %v1312_v10 = vld [vmem:[%s1649_s27 + $0x34] sm:$0xf0]  ;;  %v1254_v12 = vor.u32 %v1334_v2, %v1251_v3  ;;  %v1338_v13 = vld [vmem:[%s1649_s27 + $0x10c] sm:$0xf] }
  0x63   : > { %630 = vmatpush.bf16.msra.mxu0 %v1162_v44  ;;  %v1153_v9 = vld [vmem:[%s1649_s27 + $0x28] sm:$0xf]  ;;  %v1267_v14 = vld [vmem:[%s1649_s27 + $0x118] sm:$0xf0]  ;;  %v1330_v15 = vld [vmem:[%s1649_s27 + $0xcc] sm:$0xf]  ;;  %v1114_v18 = vor.u32 %v1302_v7, %v1113_v5 }
  0x64   : > { %704 = vmatpush.bf16.msrb.mxu1 %v1202_v42  ;;  %v1235_v16 = vld [vmem:[%s1649_s27 + $0xd8] sm:$0xf0]  ;;  %v1270_v17 = vor.u32 %v1338_v13, %v1267_v14  ;;  %v1154_v19 = vor.u32 %v1312_v10, %v1153_v9  ;;  %v1137_v20 = vld [vmem:[%s1649_s27 + $0x8] sm:$0xf]  ;;  %v1308_v21 = vld [vmem:[%s1649_s27 + $0x14] sm:$0xf0] }
  0x65   : > { %668 = vmatpush.bf16.msra.mxu2 %v1166_v48  ;;  %v1238_v22 = vor.u32 %v1330_v15, %v1235_v16  ;;  %v1326_v23 = vld [vmem:[%s1649_s27 + $0xac] sm:$0xf]  ;;  %v1219_v24 = vld [vmem:[%s1649_s27 + $0xb8] sm:$0xf0]  ;;  %v1138_v25 = vor.u32 %v1308_v21, %v1137_v20  ;;  %v1121_v32 = vld [vmem:[%s1860_s1 + $0x10] sm:$0xf] }
  0x66   : > { %1354 = vmatpush.bf16.msra.mxu3 %v1270_v17  ;;  %v1222_v26 = vor.u32 %v1326_v23, %v1219_v24  ;;  %v1322_v27 = vld [vmem:[%s1649_s27 + $0x8c] sm:$0xf]  ;;  %v1203_v28 = vld [vmem:[%s1649_s27 + $0x98] sm:$0xf0]  ;;  %v1304_v33 = vld [vmem:[%s1860_s1 + $0x14] sm:$0xf0] }
  0x67   : > { %1288 = vmatmul.msk.bf16.gmra.mxu1 %vm618_vm0, %v1721_v57  ;;  %631 = vmatpush.bf16.msra.mxu0 %v1146_v58  ;;  %v1206_v29 = vor.u32 %v1322_v27, %v1203_v28  ;;  %v1318_v30 = vld [vmem:[%s1649_s27 + $0x6c] sm:$0xf]  ;;  %v1187_v31 = vld [vmem:[%s1649_s27 + $0x78] sm:$0xf0]  ;;  %v1122_v35 = vor.u32 %v1304_v33, %v1121_v32  ;;  %s1106_s8 = sshll.u32 %s338_s15, 3  ;;  %vm829_vm1 = vcmask 7168  }
  0x68   : > { %705 = vmatpush.bf16.msrb.mxu1 %v1186_v55  ;;  %v1190_v34 = vor.u32 %v1318_v30, %v1187_v31  ;;  %v1314_v36 = vld [vmem:[%s1649_s27 + $0x4c] sm:$0xf]  ;;  %v1171_v37 = vld [vmem:[%s1649_s27 + $0x58] sm:$0xf0]  ;;  %s1296_s29 = sshll.u32 (%p1543_p6), %s1452_s17, 2  ;;  %s1297_s5 = sshll.u32 (%p1543_p6), %s1456_s18, 5 }
  0x69   : > { %1290 = vmatmul.msk.bf16.gmra.mxu3 %vm618_vm0, %v1721_v57  ;;  %669 = vmatpush.bf16.msra.mxu2 %v1150_v61  ;;  %v1174_v38 = vor.u32 %v1314_v36, %v1171_v37  ;;  %v1310_v39 = vld [vmem:[%s1649_s27 + $0x2c] sm:$0xf]  ;;  %v1155_v40 = vld [vmem:[%s1649_s27 + $0x38] sm:$0xf0] }
  0x6a   : > { %v1158_v41 = vor.u32 %v1310_v39, %v1155_v40  ;;  %v1306_v42 = vld [vmem:[%s1649_s27 + $0xc] sm:$0xf]  ;;  %v1139_v43 = vld [vmem:[%s1649_s27 + $0x18] sm:$0xf0]  ;;  %s1104_s27 = sshll.u32 %s293_s24, 6 }
  0x6b   : > { %632 = vmatpush.bf16.msra.mxu0 %v1130_v6  ;;  %v1142_v44 = vor.u32 %v1306_v42, %v1139_v43  ;;  %s1777_s6 = scalar_lea.vmem [#allocation3], %s1104_s27  ;;  %s901_s27 = sadd.s32 (%p1543_p6), %s1297_s5, %s1296_s29 }
  0x6c   : > { %706 = vmatpush.bf16.msrb.mxu1 %v1170_v4  ;;  %s340_s24 = scalar_select %p339_p13, %s1452_s17, 1 }
  0x6d   : > { %670 = vmatpush.bf16.msra.mxu2 %v1134_v11  ;;  %s1298_s15 = sshll.u32 (%p1543_p6), %s901_s27, 2 }
  0x6e   : > { %633 = vmatmul.bf16.vlgmr.msra.gmra.mxu0 %v1114_v18  ;;  %s1105_s7 = sshll.u32 %s340_s24, 2  ;;  %s903_s26 = scalar_lea.vmem (%p1543_p6), %s1861_s2, %s1298_s15 }
  0x6f   : > { %739 = vmatpush.bf16.msrb.mxu0 %v1254_v12  ;;  %s343_s9 = sadd.s32 %s1106_s8, %s1105_s7 }
  0x70   : > { %707 = vmatpush.bf16.msrb.mxu1 %v1154_v19  ;;  %671 = vmatmul.bf16.vlgmr.msra.gmra.mxu2 %v1114_v18  ;;  %s1107_s10 = sshll.u32 %s343_s9, 3 }
  0x71   : > { %764 = vmatpush.bf16.msrb.mxu2 %v1286_v56  ;;  %s345_s13 = scalar_lea.vmem %s1862_s3, %s1107_s10  ;;  %s354_s28 = scalar_lea.vmem %s1863_s4, %s1107_s10 }
  0x73   : > { %740 = vmatpush.bf16.msrb.mxu0 %v1238_v22 }
  0x74   : > { %708 = vmatpush.bf16.msrb.mxu1 %v1138_v25 }
  0x75   : > { %765 = vmatpush.bf16.msrb.mxu2 %v1270_v17 }
  0x77   : > { %741 = vmatpush.bf16.msrb.mxu0 %v1222_v26  ;;  %709 = vmatmul.bf16.vlgmr.msrb.gmra.mxu1 %v1114_v18 }
  0x78   : > { %1345 = vmatpush.bf16.msra.mxu1 %v1254_v12 }
  0x79   : > { %1291 = vmatmul.msk.bf16.vlgmr.msrb.gmra.mxu3 %vm618_vm0, %v1678_v8 }
  0x7b   : > { %742 = vmatpush.bf16.msrb.mxu0 %v1206_v29 }
  0x7c   : > { %1346 = vmatpush.bf16.msra.mxu1 %v1238_v22 }
  0x7e   : > { %638 = vmatmul.bf16.gmra.mxu0 %v1122_v35 }
  0x7f   : > { %743 = vmatpush.bf16.msrb.mxu0 %v1190_v34 }
  0x80   : > { %1347 = vmatpush.bf16.msra.mxu1 %v1222_v26  ;;  %676 = vmatmul.bf16.gmra.mxu2 %v1122_v35 }
  0x83   : > { %744 = vmatpush.bf16.msrb.mxu0 %v1174_v38 }
  0x84   : > { %1348 = vmatpush.bf16.msra.mxu1 %v1206_v29 }
  0x87   : > { %745 = vmatpush.bf16.msrb.mxu0 %v1158_v41  ;;  %714 = vmatmul.bf16.gmra.mxu1 %v1122_v35 }
  0x88   : > { %1349 = vmatpush.bf16.msra.mxu1 %v1190_v34 }
  0x89   : > { %1292 = vmatmul.msk.bf16.gmra.mxu3 %vm618_vm0, %v1721_v57 }
  0x8b   : > { %746 = vmatpush.bf16.msrb.mxu0 %v1142_v44 }
  0x8c   : > { %1350 = vmatpush.bf16.msra.mxu1 %v1174_v38 }
  0x8e   : > { %747 = vmatmul.bf16.vlgmr.msrb.gmra.mxu0 %v1114_v18 }
  0x90   : > { %1351 = vmatpush.bf16.msra.mxu1 %v1158_v41  ;;  %1293 = vmatmul.msk.bf16.vlgmr.msrb.gmra.mxu2 %vm618_vm0, %v1678_v8 }
  0x94   : > { %1352 = vmatpush.bf16.msra.mxu1 %v1142_v44 }
  0x97   : > { %752 = vmatmul.bf16.vlgmr.msra.gmra.mxu1 %v1122_v35 }
  0x99   : > { %1294 = vmatmul.msk.bf16.vlgmr.msra.gmra.mxu3 %vm618_vm0, %v1721_v57 }
  0xd4   : > { %v653_v45 = vpop.f32.mrf.mxu1 }
  0xdc   : > { %v691_v46 = vpop.f32.mrf.mxu3  ;;  %v655_v47 = vpop.f32.mrf.mxu1 }
  0xe4   : > { %v693_v48 = vpop.f32.mrf.mxu3  ;;  %v658_v49 = vpop.f32.mrf.mxu1 }
  0xeb   : > { %v634_v51 = vpop.f32.mrf.mxu0 }
  0xec   : > { %v696_v50 = vpop.f32.mrf.mxu3  ;;  %v660_v52 = vpop.f32.mrf.mxu1  ;;  %v654_v53 = vadd.f32 %v653_v45, %v634_v51 }
  0xee   : > { %v777_v59 = vmax.f32 %v654_v53, 0.0 }
  0xf0   : > { %v834_v28 = vmul.f32 %v777_v59, %v777_v59 }
  0xf3   : > { %v672_v54 = vpop.f32.mrf.mxu2  ;;  %v636_v8 = vpop.f32.mrf.mxu0 }
  0xf4   : > { %v692_v55 = vadd.f32 %v691_v46, %v672_v54  ;;  %v698_v56 = vpop.f32.mrf.mxu3  ;;  %v710_v58 = vpop.f32.mrf.mxu1  ;;  %v656_v57 = vadd.f32 %v655_v47, %v636_v8 }
  0xf6   : > { %v778_v60 = vmax.f32 %v692_v55, 0.0  ;;  %v781_v3 = vmax.f32 %v656_v57, 0.0 }
  0xf8   : > { %v793_v61 = vpack.c.bf16 %v778_v60, %v777_v59  ;;  %v835_v27 = vmul.f32 %v778_v60, %v778_v60  ;;  %v809_v34 = vadd.f32 %v778_v60, %v777_v59 }
  0xfa   : > { %801 = vst [vmem:[%s1777_s6] sm:$0xff] %v793_v61  ;;  %v850_v35 = vadd.f32 %v835_v27, %v834_v28 }
  0xfb   : > { %v674_v62 = vpop.f32.mrf.mxu2  ;;  %v639_v1 = vpop.f32.mrf.mxu0 }
  0xfc   : > { %v694_v63 = vadd.f32 %v693_v48, %v674_v62  ;;  %v729_v0 = vpop.f32.mrf.mxu3  ;;  %v712_v2 = vpop.f32.mrf.mxu1  ;;  %v659_v6 = vadd.f32 %v658_v49, %v639_v1 }
  0xfd   : > { %v730_v17 = vadd.f32 %v729_v0, %v710_v58 }
  0xfe   : > { %v782_v4 = vmax.f32 %v694_v63, 0.0  ;;  %v1781_v11 = vmax.f32 %v659_v6, 0.0 }
  0xff   : > { %v779_v23 = vmax.f32 %v730_v17, 0.0 }
 0x100   : > { %v795_v5 = vpack.c.bf16 %v782_v4, %v781_v3  ;;  %v839_v45 = vmul.f32 %v782_v4, %v782_v4  ;;  %v814_v53 = vadd.f32 %v782_v4, %v781_v3 }
 0x101   : > { %v836_v30 = vmul.f32 %v779_v23, %v779_v23  ;;  %v810_v37 = vadd.f32 %v809_v34, %v779_v23 }
 0x102   : > { %803 = vst [vmem:[%s1777_s6 + $0x10] sm:$0xff] %v795_v5 }
 0x103   : > { %v677_v7 = vpop.f32.mrf.mxu2  ;;  %v641_v14 = vpop.f32.mrf.mxu0  ;;  %v851_v39 = vadd.f32 %v850_v35, %v836_v30 }
 0x104   : > { %v697_v9 = vadd.f32 %v696_v50, %v677_v7  ;;  %v731_v10 = vpop.f32.mrf.mxu3  ;;  %v715_v13 = vpop.f32.mrf.mxu1  ;;  %v661_v16 = vadd.f32 %v660_v52, %v641_v14  ;;  %v838_v50 = vmul.f32 %v781_v3, %v781_v3  ;;  %v842_v3 = vmul.f32 %v1781_v11, %v1781_v11 }
 0x105   : > { %v732_v31 = vadd.f32 %v731_v10, %v712_v2 }
 0x106   : > { %v786_v12 = vmax.f32 %v697_v9, 0.0  ;;  %v1785_v21 = vmax.f32 %v661_v16, 0.0  ;;  %v855_v59 = vadd.f32 %v839_v45, %v838_v50 }
 0x107   : > { %v783_v40 = vmax.f32 %v732_v31, 0.0 }
 0x108   : > { %v797_v15 = vpack.c.bf16 %v786_v12, %v1781_v11  ;;  %v843_v60 = vmul.f32 %v786_v12, %v786_v12 }
 0x109   : > { %v840_v54 = vmul.f32 %v783_v40, %v783_v40  ;;  %v815_v58 = vadd.f32 %v814_v53, %v783_v40 }
 0x10a   : > { %805 = vst [vmem:[%s1777_s6 + $0x20] sm:$0xff] %v797_v15  ;;  %v860_v14 = vadd.f32 %v843_v60, %v842_v3 }
 0x10b   : > { %v679_v18 = vpop.f32.mrf.mxu2  ;;  %v748_v24 = vpop.f32.mrf.mxu0  ;;  %v856_v2 = vadd.f32 %v855_v59, %v840_v54 }
 0x10c   : > { %v699_v19 = vadd.f32 %v698_v56, %v679_v18  ;;  %v734_v20 = vpop.f32.mrf.mxu3  ;;  %v717_v26 = vpop.f32.mrf.mxu1  ;;  %v819_v56 = vadd.f32 %v786_v12, %v1781_v11 }
 0x10d   : > { %v735_v38 = vadd.f32 %v734_v20, %v715_v13 }
 0x10e   : > { %v1787_v22 = vmax.f32 %v699_v19, 0.0 }
 0x10f   : > { %v787_v48 = vmax.f32 %v735_v38, 0.0 }
 0x110   : > { %v799_v25 = vpack.c.bf16 %v1787_v22, %v1785_v21  ;;  %v824_v16 = vadd.f32 %v1787_v22, %v1785_v21  ;;  %v847_v20 = vmul.f32 %v1787_v22, %v1787_v22 }
 0x111   : > { %v820_v62 = vadd.f32 %v819_v56, %v787_v48  ;;  %v844_v7 = vmul.f32 %v787_v48, %v787_v48 }
 0x112   : > { %807 = vst [vmem:[%s1777_s6 + $0x30] sm:$0xff] %v799_v25  ;;  %v846_v25 = vmul.f32 %v1785_v21, %v1785_v21 }
 0x113   : > { %v767_v29 = vpop.f32.mrf.mxu2  ;;  %v750_v44 = vpop.f32.mrf.mxu0  ;;  %v861_v17 = vadd.f32 %v860_v14, %v844_v7 }
 0x114   : > { %v736_v32 = vpop.f32.mrf.mxu3  ;;  %v768_v33 = vadd.f32 %v767_v29, %v748_v24  ;;  %v753_v46 = vpop.f32.mrf.mxu1  ;;  %v865_v28 = vadd.f32 %v847_v20, %v846_v25 }
 0x115   : > { %v737_v61 = vadd.f32 %v736_v32, %v717_v26 }
 0x116   : > { %v780_v36 = vmax.f32 %v768_v33, 0.0 }
 0x117   : > { %v791_v9 = vmax.f32 %v737_v61, 0.0 }
 0x118   : > { %v794_v41 = vpack.c.bf16 %v780_v36, %v779_v23  ;;  %v811_v42 = vadd.f32 %v810_v37, %v780_v36  ;;  %v837_v43 = vmul.f32 %v780_v36, %v780_v36  ;;  %v916_v37 = vld [vmem:[%s1777_s6] sm:$0xff] (%p1543_p6) }
 0x119   : > { %v825_v11 = vadd.f32 %v824_v16, %v791_v9  ;;  %v848_v26 = vmul.f32 %v791_v9, %v791_v9  ;;  %917 = vst [vmem:[%s903_s26] sm:$0xff] (%p1543_p6), %v916_v37 }
 0x11a   : > { %802 = vst [vmem:[%s1777_s6 + $0x8] sm:$0xff] %v794_v41  ;;  %812 = vadd.xlane.f32.xlu0 %v811_v42  ;;  %v852_v47 = vadd.f32 %v851_v39, %v837_v43  ;;  %v920_v39 = vld [vmem:[%s1777_s6 + $0x10] sm:$0xff] (%p1543_p6)  ;;  %v924_v41 = vld [vmem:[%s1777_s6 + $0x20] sm:$0xff] (%p1543_p6) }
 0x11b   : > { %v769_v49 = vpop.f32.mrf.mxu2  ;;  %v866_v29 = vadd.f32 %v865_v28, %v848_v26  ;;  %921 = vst [vmem:[%s903_s26 + $0x20] sm:$0xff] (%p1543_p6), %v920_v39  ;;  %v928_v43 = vld [vmem:[%s1777_s6 + $0x30] sm:$0xff] (%p1543_p6) }
 0x11c   : > { %v770_v51 = vadd.f32 %v769_v49, %v750_v44  ;;  %v772_v52 = vpop.f32.mrf.mxu3  ;;  %853 = vadd.xlane.f32.xlu2 %v852_v47  ;;  %v755_v10 = vpop.f32.mrf.mxu1  ;;  %925 = vst [vmem:[%s903_s26 + $0x40] sm:$0xff] (%p1543_p6), %v924_v41 }
 0x11d   : > { %v773_v55 = vadd.f32 %v772_v52, %v753_v46  ;;  %929 = vst [vmem:[%s903_s26 + $0x60] sm:$0xff] (%p1543_p6), %v928_v43 }
 0x11e   : > { %v784_v8 = vmax.f32 %v770_v51, 0.0 }
 0x11f   : > { %v788_v57 = vmax.f32 %v773_v55, 0.0 }
 0x120   : > { %v796_v63 = vpack.c.bf16 %v784_v8, %v783_v40  ;;  %v816_v0 = vadd.f32 %v815_v58, %v784_v8  ;;  %v841_v1 = vmul.f32 %v784_v8, %v784_v8 }
 0x121   : > { %v798_v5 = vpack.c.bf16 %v788_v57, %v787_v48  ;;  %v821_v6 = vadd.f32 %v820_v62, %v788_v57  ;;  %v845_v13 = vmul.f32 %v788_v57, %v788_v57  ;;  %v918_v38 = vld [vmem:[%s1777_s6 + $0x8] sm:$0xff] (%p1543_p6) }
 0x122   : > { %804 = vst [vmem:[%s1777_s6 + $0x18] sm:$0xff] %v796_v63  ;;  %817 = vadd.xlane.f32.xlu0 %v816_v0  ;;  %v857_v4 = vadd.f32 %v856_v2, %v841_v1 }
 0x123   : > { %806 = vst [vmem:[%s1777_s6 + $0x28] sm:$0xff] %v798_v5  ;;  %822 = vadd.xlane.f32.xlu1 %v821_v6  ;;  %v862_v19 = vadd.f32 %v861_v17, %v845_v13 }
 0x124   : > { %v774_v12 = vpop.f32.mrf.mxu3  ;;  %858 = vadd.xlane.f32.xlu2 %v857_v4  ;;  %919 = vst [vmem:[%s903_s26 + $0x8] sm:$0xff] (%p1543_p6), %v918_v38 }
 0x125   : > { %v775_v15 = vadd.f32 %v774_v12, %v755_v10 }
 0x127   : > { %v792_v18 = vmax.f32 %v775_v15, 0.0 }
 0x129   : > { %v800_v23 = vpack.c.bf16 %v792_v18, %v791_v9  ;;  %v826_v24 = vadd.f32 %v825_v11, %v792_v18  ;;  %v849_v27 = vmul.f32 %v792_v18, %v792_v18  ;;  %v922_v40 = vld [vmem:[%s1777_s6 + $0x18] sm:$0xff] (%p1543_p6) }
 0x12a   : > { %863 = vadd.xlane.f32.xlu0 %v862_v19  ;;  %v926_v42 = vld [vmem:[%s1777_s6 + $0x28] sm:$0xff] (%p1543_p6)  ;;  %923 = vst [vmem:[%s903_s26 + $0x28] sm:$0xff] (%p1543_p6), %v922_v40 }
 0x12b   : > { %808 = vst [vmem:[%s1777_s6 + $0x38] sm:$0xff] %v800_v23  ;;  %827 = vadd.xlane.f32.xlu1 %v826_v24  ;;  %v867_v30 = vadd.f32 %v866_v29, %v849_v27 }
 0x12c   : > { %927 = vst [vmem:[%s903_s26 + $0x48] sm:$0xff] (%p1543_p6), %v926_v42 }
 0x132   : > { %v930_v44 = vld [vmem:[%s1777_s6 + $0x38] sm:$0xff] (%p1543_p6) }
 0x133   : > { %868 = vadd.xlane.f32.xlu1 %v867_v30  ;;  %931 = vst [vmem:[%s903_s26 + $0x68] sm:$0xff] (%p1543_p6), %v930_v44 }
 0x18d   : > { %v813_v21 = vpop.xlane.xlu0 %812 }
 0x18e   : > { %830 = vst.msk [vmem:[%s345_s13] sm:$0xff] %vm829_vm1, %v813_v21 }
 0x18f   : > { %v854_v22 = vpop.xlane.xlu2 %853 }
 0x190   : > { %870 = vst.msk [vmem:[%s354_s28] sm:$0xff] %vm829_vm1, %v854_v22 }
 0x195   : > { %v818_v31 = vpop.xlane.xlu0 %817 }
 0x196   : > { %v823_v32 = vpop.xlane.xlu1 %822  ;;  %831 = vst.msk [vmem:[%s345_s13 + $0x8] sm:$0xff] %vm829_vm1, %v818_v31 }
 0x197   : > { %832 = vst.msk [vmem:[%s345_s13 + $0x10] sm:$0xff] %vm829_vm1, %v823_v32  ;;  %v859_v33 = vpop.xlane.xlu2 %858 }
 0x198   : > { %871 = vst.msk [vmem:[%s354_s28 + $0x8] sm:$0xff] %vm829_vm1, %v859_v33 }
 0x19d   : > { %v864_v34 = vpop.xlane.xlu0 %863 }
 0x19e   : > { %872 = vst.msk [vmem:[%s354_s28 + $0x10] sm:$0xff] %vm829_vm1, %v864_v34  ;;  %v828_v35 = vpop.xlane.xlu1 %827 }
 0x19f   : > { %833 = vst.msk [vmem:[%s345_s13 + $0x18] sm:$0xff] %vm829_vm1, %v828_v35 }
 0x1a3   : > { %898 = sbr.rel (!%p1543_p6) target bundleno = 424 (0x1a8), region = 55 }
 0x1a6   : > { %v869_v36 = vpop.xlane.xlu1 %868 }
 0x1a7   : > { %873 = vst.msk [vmem:[%s354_s28 + $0x18] sm:$0xff] %vm829_vm1, %v869_v36 }
 0x1a8 PF: > { %s15_s21 = sadd.s32 1, %s1468_s21   ;;  %s1865_s15 = smov %s1448_s16 }
 0x1a9   : > { %p12_p0 = scmp.ge.s32.totalorder %s15_s21, 6   ;;  %s1866_s16 = smov %s1551_s30 }
 0x1aa   : > { %s1867_s17 = smov %s1460_s19  ;;  %s1868_s18 = smov %s1464_s20 }
 0x1ab   : > { %s1869_s19 = smov %s1872_s22  ;;  %s1870_s20 = smov %s1876_s23 }
 0x1ac   :  { %14 = sbr.rel (!%p12_p0) target bundleno = 4 (0x4), region = 133 }

// kernel: mresconv_forward.5
= control target key start
LH: loop header
LB: loop body
LE: loop exit
PB: predicated region body
PF: predicated region fallthrough
CT: control target
= control target key end

     0   :  { %8 = vsyncpa [#allocation5], 0  ;;  %s1794_s0 = inlined_call_operand.vmem [shape: bf16[2,160,1024], index: 0, kind: input, shape index: {}]   ;;  %s1795_s1 = inlined_call_operand.vmem [shape: bf16[32,160], index: 1, kind: input, shape index: {}]   ;;  %s1796_s2 = inlined_call_operand.vmem [shape: bf16[2,32,1024], index: 2, kind: input, shape index: {}]   ;;  %s1797_s3 = inlined_call_operand.hbm [shape: f32[2,32,1024], index: 3, kind: output, shape index: {}]  }
   0x1   :  { %10 = vsyncpa [#allocation5 + $0x1], 0  ;;  %s1401_s12 = smov 0   ;;  %s1403_s13 = smov 0  }
   0x2   :  { %s1405_s14 = smov 0   ;;  %s1407_s15 = smov 0  }
   0x3   :  { %s1409_s16 = smov 0   ;;  %s1411_s17 = smov 0  }
   0x4   :  { %s1413_s18 = smov 0   ;;  %s1415_s19 = smov 0  }
   0x5 LB: > { %s948_s20 = sadd.s32 4294967295, %s1376_s19   ;;  %s949_s21 = sadd.s32 4294967294, %s1376_s19   ;;  %s1376_s19 = sphi %s1415_s19, %s16_s19   ;;  %s1372_s18 = sphi %s1413_s18, %s1807_s18   ;;  %s1368_s17 = sphi %s1411_s17, %s1806_s17   ;;  %s1364_s16 = sphi %s1409_s16, %s1805_s16   ;;  %s1360_s15 = sphi %s1407_s15, %s1804_s15   ;;  %s1356_s14 = sphi %s1405_s14, %s1803_s14   ;;  %s1352_s13 = sphi %s1403_s13, %s1802_s13   ;;  %s1348_s12 = sphi %s1401_s12, %s1801_s12  }
   0x6   : > { %s25_s22 = sadd.s32 1, %s1368_s17  ;;  %s28_s23 = sadd.s32 1, %s1372_s18 }
   0x7   : > { %p26_p0 = scmp.ge.s32.totalorder %s25_s22, 2  ;;  %p44_p1 = scmp.ne.s32.totalorder %s1356_s14, %s1352_s13 }
   0x8   : > { %p45_p2 = scmp.eq.s32.totalorder %s1376_s19, 0  ;;  %p125_p5 = scmp.eq.s32.totalorder %s948_s20, 3 }
   0x9   : > { %s1809_s22 = smov (%p26_p0, %s25_s22), 0  ;;  %s1811_s23 = smov (!%p26_p0, %s28_s23), %s1372_s18 }
   0xa   : > { %s33_s24 = ssub.s32 %s1368_s17, %s1809_s22  ;;  %p1453_p3 = por %p45_p2, %p44_p1 }
   0xb   : > { %p30_p4 = scmp.ge.s32.totalorder %s1811_s23, 2  ;;  %p130_p6 = scmp.ne.s32.totalorder %s1352_s13, %s1348_s12 }
   0xc   : > { %p131_p7 = scmp.eq.s32.totalorder %s949_s21, 3  ;;  %p1461_p8 = por %p125_p5, %p44_p1 }
   0xd   : > { %s1813_s23 = smov (%p30_p4, %s1811_s23), 0  ;;  %s37_s30 = sadd.s32 1, %s1356_s14 }
   0xe   : > { %p1465_p9 = por %p131_p7, %p130_p6  ;;  %s32_s28 = ssub.s32 %s1372_s18, %s1813_s23 }
   0xf   : > { %s34_s29 = sor.u32 %s33_s24, %s32_s28  ;;  %p951_p11 = scmp.ge.s32.totalorder %s1376_s19, 4 }
  0x10   : > { %p35_p10 = scmp.eq.s32.totalorder %s34_s29, 0 }
  0x11   : > { %150 = sbr.rel (%p951_p11) target bundleno = 85 (0x55), region = 20 }
  0x12   : > { %s1473_s4 = scalar_select %p35_p10, %s1356_s14, %s37_s30  }
  0x16   : > { %153 = sbr.rel (!%p1453_p3) target bundleno = 70 (0x46), region = 24  ;;  %s155_s5 = sand.u32 (%p1453_p3), 1, %s1356_s14  }
  0x17   : > { %s1205_s6 = smul.u32 (%p1453_p3), 320, %s155_s5  ;;  %s952_s7 = sshll.u32 (%p1453_p3), %s1368_s17, 2 }
  0x18   : > { %s1206_s8 = smul.u32 (%p1453_p3), 160, %s1372_s18 }
  0x19   : > { %s1489_s24 = scalar_lea.vmem (%p1453_p3), [#allocation2], %s1205_s6 }
  0x1a   : > { %s160_s9 = sadd.s32 (%p1453_p3), %s1206_s8, %s952_s7 }
  0x1b   : > { %s953_s10 = sshll.u32 %s160_s9, 2 }
  0x1c   : > { %s1484_s21 = scalar_lea.vmem %s1794_s0, %s953_s10 }
  0x1d   : > { %v175_v0 = vld [vmem:[%s1484_s21] sm:$0xff]  ;;  %v177_v1 = vld [vmem:[%s1484_s21 + $0x8] sm:$0xff] }
  0x1e   : > { %v179_v2 = vld [vmem:[%s1484_s21 + $0x20] sm:$0xff]  ;;  %176 = vst [vmem:[%s1489_s24] sm:$0xff] %v175_v0  ;;  %v181_v3 = vld [vmem:[%s1484_s21 + $0x28] sm:$0xff] }
  0x1f   : > { %178 = vst [vmem:[%s1489_s24 + $0x8] sm:$0xff] %v177_v1  ;;  %v183_v4 = vld [vmem:[%s1484_s21 + $0x40] sm:$0xff]  ;;  %v185_v5 = vld [vmem:[%s1484_s21 + $0x48] sm:$0xff] }
  0x20   : > { %180 = vst [vmem:[%s1489_s24 + $0x10] sm:$0xff] %v179_v2  ;;  %v187_v6 = vld [vmem:[%s1484_s21 + $0x60] sm:$0xff]  ;;  %v189_v7 = vld [vmem:[%s1484_s21 + $0x68] sm:$0xff] }
  0x21   : > { %182 = vst [vmem:[%s1489_s24 + $0x18] sm:$0xff] %v181_v3  ;;  %v191_v8 = vld [vmem:[%s1484_s21 + $0x80] sm:$0xff]  ;;  %v193_v9 = vld [vmem:[%s1484_s21 + $0x88] sm:$0xff] }
  0x22   : > { %184 = vst [vmem:[%s1489_s24 + $0x20] sm:$0xff] %v183_v4  ;;  %v195_v10 = vld [vmem:[%s1484_s21 + $0xa0] sm:$0xff]  ;;  %v197_v11 = vld [vmem:[%s1484_s21 + $0xa8] sm:$0xff] }
  0x23   : > { %186 = vst [vmem:[%s1489_s24 + $0x28] sm:$0xff] %v185_v5  ;;  %v199_v12 = vld [vmem:[%s1484_s21 + $0xc0] sm:$0xff]  ;;  %v201_v13 = vld [vmem:[%s1484_s21 + $0xc8] sm:$0xff] }
  0x24   : > { %188 = vst [vmem:[%s1489_s24 + $0x30] sm:$0xff] %v187_v6  ;;  %v203_v14 = vld [vmem:[%s1484_s21 + $0xe0] sm:$0xff]  ;;  %v205_v15 = vld [vmem:[%s1484_s21 + $0xe8] sm:$0xff] }
  0x25   : > { %190 = vst [vmem:[%s1489_s24 + $0x38] sm:$0xff] %v189_v7  ;;  %v207_v16 = vld [vmem:[%s1484_s21 + $0x100] sm:$0xff]  ;;  %v209_v17 = vld [vmem:[%s1484_s21 + $0x108] sm:$0xff] }
  0x26   : > { %192 = vst [vmem:[%s1489_s24 + $0x40] sm:$0xff] %v191_v8  ;;  %v211_v18 = vld [vmem:[%s1484_s21 + $0x120] sm:$0xff]  ;;  %v213_v19 = vld [vmem:[%s1484_s21 + $0x128] sm:$0xff] }
  0x27   : > { %194 = vst [vmem:[%s1489_s24 + $0x48] sm:$0xff] %v193_v9  ;;  %v215_v20 = vld [vmem:[%s1484_s21 + $0x140] sm:$0xff]  ;;  %v217_v21 = vld [vmem:[%s1484_s21 + $0x148] sm:$0xff] }
  0x28   : > { %196 = vst [vmem:[%s1489_s24 + $0x50] sm:$0xff] %v195_v10  ;;  %v219_v22 = vld [vmem:[%s1484_s21 + $0x160] sm:$0xff]  ;;  %v221_v23 = vld [vmem:[%s1484_s21 + $0x168] sm:$0xff] }
  0x29   : > { %198 = vst [vmem:[%s1489_s24 + $0x58] sm:$0xff] %v197_v11  ;;  %v223_v24 = vld [vmem:[%s1484_s21 + $0x180] sm:$0xff]  ;;  %v225_v25 = vld [vmem:[%s1484_s21 + $0x188] sm:$0xff] }
  0x2a   : > { %200 = vst [vmem:[%s1489_s24 + $0x60] sm:$0xff] %v199_v12  ;;  %v227_v26 = vld [vmem:[%s1484_s21 + $0x1a0] sm:$0xff]  ;;  %v229_v27 = vld [vmem:[%s1484_s21 + $0x1a8] sm:$0xff] }
  0x2b   : > { %202 = vst [vmem:[%s1489_s24 + $0x68] sm:$0xff] %v201_v13  ;;  %v231_v28 = vld [vmem:[%s1484_s21 + $0x1c0] sm:$0xff]  ;;  %v233_v29 = vld [vmem:[%s1484_s21 + $0x1c8] sm:$0xff] }
  0x2c   : > { %204 = vst [vmem:[%s1489_s24 + $0x70] sm:$0xff] %v203_v14  ;;  %v235_v30 = vld [vmem:[%s1484_s21 + $0x1e0] sm:$0xff]  ;;  %v237_v31 = vld [vmem:[%s1484_s21 + $0x1e8] sm:$0xff] }
  0x2d   : > { %206 = vst [vmem:[%s1489_s24 + $0x78] sm:$0xff] %v205_v15  ;;  %v239_v32 = vld [vmem:[%s1484_s21 + $0x200] sm:$0xff]  ;;  %v241_v33 = vld [vmem:[%s1484_s21 + $0x208] sm:$0xff] }
  0x2e   : > { %208 = vst [vmem:[%s1489_s24 + $0x80] sm:$0xff] %v207_v16  ;;  %v243_v34 = vld [vmem:[%s1484_s21 + $0x220] sm:$0xff]  ;;  %v245_v35 = vld [vmem:[%s1484_s21 + $0x228] sm:$0xff] }
  0x2f   : > { %210 = vst [vmem:[%s1489_s24 + $0x88] sm:$0xff] %v209_v17  ;;  %v247_v36 = vld [vmem:[%s1484_s21 + $0x240] sm:$0xff]  ;;  %v249_v37 = vld [vmem:[%s1484_s21 + $0x248] sm:$0xff] }
  0x30   : > { %212 = vst [vmem:[%s1489_s24 + $0x90] sm:$0xff] %v211_v18  ;;  %v251_v38 = vld [vmem:[%s1484_s21 + $0x260] sm:$0xff]  ;;  %v253_v39 = vld [vmem:[%s1484_s21 + $0x268] sm:$0xff] }
  0x31   : > { %214 = vst [vmem:[%s1489_s24 + $0x98] sm:$0xff] %v213_v19 }
  0x32   : > { %216 = vst [vmem:[%s1489_s24 + $0xa0] sm:$0xff] %v215_v20 }
  0x33   : > { %218 = vst [vmem:[%s1489_s24 + $0xa8] sm:$0xff] %v217_v21 }
  0x34   : > { %220 = vst [vmem:[%s1489_s24 + $0xb0] sm:$0xff] %v219_v22 }
  0x35   : > { %222 = vst [vmem:[%s1489_s24 + $0xb8] sm:$0xff] %v221_v23 }
  0x36   : > { %224 = vst [vmem:[%s1489_s24 + $0xc0] sm:$0xff] %v223_v24 }
  0x37   : > { %226 = vst [vmem:[%s1489_s24 + $0xc8] sm:$0xff] %v225_v25 }
  0x38   : > { %228 = vst [vmem:[%s1489_s24 + $0xd0] sm:$0xff] %v227_v26 }
  0x39   : > { %230 = vst [vmem:[%s1489_s24 + $0xd8] sm:$0xff] %v229_v27 }
  0x3a   : > { %232 = vst [vmem:[%s1489_s24 + $0xe0] sm:$0xff] %v231_v28 }
  0x3b   : > { %234 = vst [vmem:[%s1489_s24 + $0xe8] sm:$0xff] %v233_v29 }
  0x3c   : > { %236 = vst [vmem:[%s1489_s24 + $0xf0] sm:$0xff] %v235_v30 }
  0x3d   : > { %238 = vst [vmem:[%s1489_s24 + $0xf8] sm:$0xff] %v237_v31 }
  0x3e   : > { %240 = vst [vmem:[%s1489_s24 + $0x100] sm:$0xff] %v239_v32 }
  0x3f   : > { %242 = vst [vmem:[%s1489_s24 + $0x108] sm:$0xff] %v241_v33 }
  0x40   : > { %244 = vst [vmem:[%s1489_s24 + $0x110] sm:$0xff] %v243_v34 }
  0x41   : > { %246 = vst [vmem:[%s1489_s24 + $0x118] sm:$0xff] %v245_v35 }
  0x42   : > { %248 = vst [vmem:[%s1489_s24 + $0x120] sm:$0xff] %v247_v36 }
  0x43   : > { %250 = vst [vmem:[%s1489_s24 + $0x128] sm:$0xff] %v249_v37 }
  0x44   : > { %252 = vst [vmem:[%s1489_s24 + $0x130] sm:$0xff] %v251_v38 }
  0x45   : > { %254 = vst [vmem:[%s1489_s24 + $0x138] sm:$0xff] %v253_v39 }
  0x46 PF: > { %260 = sbr.rel (!%p1453_p3) target bundleno = 85 (0x55), region = 47  ;;  %s262_s28 = sand.u32 (%p1453_p3), 1, %s1356_s14  }
  0x47   : > { %s955_s29 = sshll.u32 (%p1453_p3), %s1368_s17, 2  ;;  %s954_s30 = sshll.u32 (%p1453_p3), %s262_s28, 6 }
  0x48   : > { %s956_s5 = sshll.u32 (%p1453_p3), %s1372_s18, 5  ;;  %s264_s11 = scalar_lea.vmem (%p1453_p3), [#allocation3], %s954_s30 }
  0x49   : > { %s267_s6 = sadd.s32 (%p1453_p3), %s956_s5, %s955_s29 }
  0x4a   : > { %s957_s7 = sshll.u32 (%p1453_p3), %s267_s6, 2 }
  0x4b   : > { %s269_s10 = scalar_lea.vmem %s1796_s2, %s957_s7 }
  0x4c   : > { %v282_v40 = vld [vmem:[%s269_s10] sm:$0xff]  ;;  %v284_v41 = vld [vmem:[%s269_s10 + $0x8] sm:$0xff] }
  0x4d   : > { %v286_v42 = vld [vmem:[%s269_s10 + $0x20] sm:$0xff]  ;;  %283 = vst [vmem:[%s264_s11] sm:$0xff] %v282_v40  ;;  %v288_v43 = vld [vmem:[%s269_s10 + $0x28] sm:$0xff] }
  0x4e   : > { %285 = vst [vmem:[%s264_s11 + $0x8] sm:$0xff] %v284_v41  ;;  %v290_v44 = vld [vmem:[%s269_s10 + $0x40] sm:$0xff]  ;;  %v292_v45 = vld [vmem:[%s269_s10 + $0x48] sm:$0xff] }
  0x4f   : > { %287 = vst [vmem:[%s264_s11 + $0x10] sm:$0xff] %v286_v42  ;;  %v294_v46 = vld [vmem:[%s269_s10 + $0x60] sm:$0xff]  ;;  %v296_v47 = vld [vmem:[%s269_s10 + $0x68] sm:$0xff] }
  0x50   : > { %289 = vst [vmem:[%s264_s11 + $0x18] sm:$0xff] %v288_v43 }
  0x51   : > { %291 = vst [vmem:[%s264_s11 + $0x20] sm:$0xff] %v290_v44 }
  0x52   : > { %293 = vst [vmem:[%s264_s11 + $0x28] sm:$0xff] %v292_v45 }
  0x53   : > { %295 = vst [vmem:[%s264_s11 + $0x30] sm:$0xff] %v294_v46 }
  0x54   : > { %297 = vst [vmem:[%s264_s11 + $0x38] sm:$0xff] %v296_v47 }
  0x55 PF: > { %p958_p12 = scmp.ge.s32.totalorder %s1376_s19, 1  ;;  %p302_p13 = scmp.lt.s32.totalorder %s1376_s19, 5 }
  0x57   : > { %p303_p0 = pnand %p958_p12, %p302_p13 }
  0x58   : > { %s1579_s25 = sand.u32 (!%p303_p0), 1, %s1352_s13   ;;  %s1146_s8 = sshll.u32 (!%p303_p0), %s1360_s15, 2 }
  0x59   : > { %306 = sbr.rel (%p303_p0) target bundleno = 320 (0x140), region = 70  ;;  %s960_s6 = sshll.u32 (!%p303_p0), %s1579_s25, 7 }
  0x5a   : > { %s1207_s20 = smul.u32 (!%p303_p0), 320, %s1579_s25  ;;  %s1717_s7 = scalar_lea.vmem (!%p303_p0), [#allocation4], %s960_s6 }
  0x5b   : > { %s1147_s9 = sshll.u32 (!%p303_p0), %s1364_s16, 5  ;;  %s839_s24 = sshll.u32 (!%p303_p0), %s1717_s7, 4  ;;  %s840_s24 = int_to_ptr.vmem [resolvable:$true] %s839_s24 }
  0x5c   : > { %s1582_s21 = scalar_lea.vmem (!%p303_p0), [#allocation2], %s1207_s20  ;;  %s836_s10 = sadd.s32 (!%p303_p0), %s1147_s9, %s1146_s8 }
  0x5d   : > { %s1148_s11 = sshll.u32 (!%p303_p0), %s836_s10, 3  ;;  %s825_s29 = scalar_lea.sflag (!%p303_p0), [#allocation5], %s1579_s25 }
  0x5e   : > { %v1091_v48 = vld [vmem:[%s1582_s21 + $0xe0] sm:$0xf]  ;;  %v1185_v49 = vld [vmem:[%s1582_s21 + $0xec] sm:$0xf0]  ;;  %vm633_vm0 = vcmask 261120   ;;  %s838_s20 = scalar_lea.hbm %s1797_s3, %s1148_s11  ;;  %s1302_s8 = scalar_lea.hbm %s1797_s3, 512 }
  0x5f   : > { %v1123_v50 = vld [vmem:[%s1582_s21 + $0x120] sm:$0xf]  ;;  %v1092_v51 = vor.u32 %v1185_v49, %v1091_v48  ;;  %v1193_v52 = vld [vmem:[%s1582_s21 + $0x12c] sm:$0xf0]  ;;  %v1183_v53 = vld [vmem:[%s1582_s21 + $0xe4] sm:$0xf] }
  0x60   : > { %v1093_v54 = vld [vmem:[%s1582_s21 + $0xf0] sm:$0xf0]  ;;  %v1124_v55 = vor.u32 %v1193_v52, %v1123_v50  ;;  %v1191_v57 = vld [vmem:[%s1582_s21 + $0x124] sm:$0xf]  ;;  %v1075_v59 = vld [vmem:[%s1582_s21 + $0xc0] sm:$0xf] }
  0x61   : > { %v1096_v56 = vor.u32 %v1183_v53, %v1093_v54  ;;  %v1125_v58 = vld [vmem:[%s1582_s21 + $0x130] sm:$0xf0]  ;;  %v1151_v60 = vld [vmem:[%s1795_s1 + $0x4] sm:$0xf]  ;;  %v965_v61 = vld [vmem:[%s1795_s1 + $0x8] sm:$0xf0]  ;;  %640 = vmatpush.bf16.msra.mxu0 %v1092_v51 }
  0x62   : > { %v1128_v62 = vor.u32 %v1191_v57, %v1125_v58  ;;  %v1181_v63 = vld [vmem:[%s1582_s21 + $0xcc] sm:$0xf0]  ;;  %v1107_v0 = vld [vmem:[%s1582_s21 + $0x100] sm:$0xf]  ;;  %665 = vmatpush.bf16.msra.mxu1 %v1124_v55  ;;  %v1179_v4 = vld [vmem:[%s1582_s21 + $0xc4] sm:$0xf]  ;;  %v1611_v16 = vor.u32 %v1151_v60, %v965_v61 }
  0x63   : > { %v1189_v1 = vld [vmem:[%s1582_s21 + $0x10c] sm:$0xf0]  ;;  %678 = vmatpush.bf16.msra.mxu2 %v1096_v56  ;;  %v1076_v2 = vor.u32 %v1181_v63, %v1075_v59  ;;  %v1077_v5 = vld [vmem:[%s1582_s21 + $0xd0] sm:$0xf0]  ;;  %v1187_v6 = vld [vmem:[%s1582_s21 + $0x104] sm:$0xf] }
  0x64   : > { %v1108_v3 = vor.u32 %v1189_v1, %v1107_v0  ;;  %703 = vmatpush.bf16.msra.mxu3 %v1128_v62  ;;  %v1080_v7 = vor.u32 %v1179_v4, %v1077_v5  ;;  %v1109_v8 = vld [vmem:[%s1582_s21 + $0x110] sm:$0xf0]  ;;  %v1131_v9 = vld [vmem:[%s1582_s21 + $0x128] sm:$0xf]  ;;  %v1194_v10 = vld [vmem:[%s1582_s21 + $0x134] sm:$0xf0] }
  0x65   : > { %v1112_v11 = vor.u32 %v1187_v6, %v1109_v8  ;;  %v1132_v12 = vor.u32 %v1194_v10, %v1131_v9  ;;  %v1059_v13 = vld [vmem:[%s1582_s21 + $0xa0] sm:$0xf]  ;;  %v1177_v14 = vld [vmem:[%s1582_s21 + $0xac] sm:$0xf0]  ;;  %v1175_v15 = vld [vmem:[%s1582_s21 + $0xa4] sm:$0xf]  ;;  %641 = vmatpush.bf16.msra.mxu0 %v1076_v2 }
  0x66   : > { %v1060_v17 = vor.u32 %v1177_v14, %v1059_v13  ;;  %v1061_v18 = vld [vmem:[%s1582_s21 + $0xb0] sm:$0xf0]  ;;  %v1099_v19 = vld [vmem:[%s1582_s21 + $0xe8] sm:$0xf]  ;;  %v1186_v20 = vld [vmem:[%s1582_s21 + $0xf4] sm:$0xf0]  ;;  %666 = vmatpush.bf16.msra.mxu1 %v1108_v3 }
  0x67   : > { %679 = vmatpush.bf16.msra.mxu2 %v1080_v7  ;;  %v1064_v21 = vor.u32 %v1175_v15, %v1061_v18  ;;  %v1100_v22 = vor.u32 %v1186_v20, %v1099_v19  ;;  %v1043_v23 = vld [vmem:[%s1582_s21 + $0x80] sm:$0xf]  ;;  %v1173_v24 = vld [vmem:[%s1582_s21 + $0x8c] sm:$0xf0]  ;;  %v1171_v25 = vld [vmem:[%s1582_s21 + $0x84] sm:$0xf] }
  0x68   : > { %704 = vmatpush.bf16.msra.mxu3 %v1112_v11  ;;  %v1045_v26 = vld [vmem:[%s1582_s21 + $0x90] sm:$0xf0]  ;;  %v1083_v27 = vld [vmem:[%s1582_s21 + $0xc8] sm:$0xf]  ;;  %v1182_v28 = vld [vmem:[%s1582_s21 + $0xd4] sm:$0xf0]  ;;  %v1044_v30 = vor.u32 %v1173_v24, %v1043_v23 }
  0x69   : > { %v1084_v29 = vor.u32 %v1182_v28, %v1083_v27  ;;  %1137 = vmatmul.msk.bf16.vlgmr.msra.gmra.mxu1 %vm633_vm0, %v1611_v16  ;;  %642 = vmatpush.bf16.msra.mxu0 %v1060_v17  ;;  %v1067_v31 = vld [vmem:[%s1582_s21 + $0xa8] sm:$0xf]  ;;  %v1178_v32 = vld [vmem:[%s1582_s21 + $0xb4] sm:$0xf0]  ;;  %v1048_v33 = vor.u32 %v1171_v25, %v1045_v26  ;;  %v1027_v34 = vld [vmem:[%s1582_s21 + $0x60] sm:$0xf] }
  0x6a   : > { %716 = vmatpush.bf16.msrb.mxu1 %v1100_v22  ;;  %v1169_v35 = vld [vmem:[%s1582_s21 + $0x6c] sm:$0xf0]  ;;  %v1167_v36 = vld [vmem:[%s1582_s21 + $0x64] sm:$0xf]  ;;  %v1029_v37 = vld [vmem:[%s1582_s21 + $0x70] sm:$0xf0]  ;;  %v1068_v38 = vor.u32 %v1178_v32, %v1067_v31 }
  0x6b   : > { %1139 = vmatmul.msk.bf16.vlgmr.msra.gmra.mxu3 %vm633_vm0, %v1611_v16  ;;  %680 = vmatpush.bf16.msra.mxu2 %v1064_v21  ;;  %v1115_v39 = vld [vmem:[%s1582_s21 + $0x108] sm:$0xf]  ;;  %v1190_v40 = vld [vmem:[%s1582_s21 + $0x114] sm:$0xf0]  ;;  %v1028_v41 = vor.u32 %v1169_v35, %v1027_v34  ;;  %v1032_v45 = vor.u32 %v1167_v36, %v1029_v37  ;;  %v1011_v46 = vld [vmem:[%s1582_s21 + $0x40] sm:$0xf] }
  0x6c   : > { %741 = vmatpush.bf16.msrb.mxu3 %v1132_v12  ;;  %v1051_v42 = vld [vmem:[%s1582_s21 + $0x88] sm:$0xf]  ;;  %v1174_v43 = vld [vmem:[%s1582_s21 + $0x94] sm:$0xf0]  ;;  %v1116_v44 = vor.u32 %v1190_v40, %v1115_v39  ;;  %v1165_v47 = vld [vmem:[%s1582_s21 + $0x4c] sm:$0xf0] }
  0x6d   : > { %643 = vmatpush.bf16.msra.mxu0 %v1044_v30  ;;  %v1163_v48 = vld [vmem:[%s1582_s21 + $0x44] sm:$0xf]  ;;  %v1013_v49 = vld [vmem:[%s1582_s21 + $0x50] sm:$0xf0]  ;;  %v1052_v50 = vor.u32 %v1174_v43, %v1051_v42  ;;  %v1012_v52 = vor.u32 %v1165_v47, %v1011_v46  ;;  %v973_v53 = vld [vmem:[%s1795_s1 + $0x18] sm:$0xf0] }
  0x6e   : > { %717 = vmatpush.bf16.msrb.mxu1 %v1084_v29  ;;  %v1153_v51 = vld [vmem:[%s1795_s1 + $0x14] sm:$0xf]  ;;  %v1035_v54 = vld [vmem:[%s1582_s21 + $0x68] sm:$0xf]  ;;  %v1170_v55 = vld [vmem:[%s1582_s21 + $0x74] sm:$0xf0]  ;;  %v1016_v56 = vor.u32 %v1163_v48, %v1013_v49 }
  0x6f   : > { %681 = vmatpush.bf16.msra.mxu2 %v1048_v33  ;;  %v995_v57 = vld [vmem:[%s1582_s21 + $0x20] sm:$0xf]  ;;  %v1161_v58 = vld [vmem:[%s1582_s21 + $0x2c] sm:$0xf0]  ;;  %v1159_v59 = vld [vmem:[%s1582_s21 + $0x24] sm:$0xf]  ;;  %v1036_v63 = vor.u32 %v1170_v55, %v1035_v54  ;;  %v1654_v1 = vor.u32 %v1153_v51, %v973_v53 }
  0x70   : > { %742 = vmatpush.bf16.msrb.mxu3 %v1116_v44  ;;  %v997_v60 = vld [vmem:[%s1582_s21 + $0x30] sm:$0xf0]  ;;  %v1192_v61 = vld [vmem:[%s1582_s21 + $0x12c] sm:$0xf]  ;;  %v1133_v62 = vld [vmem:[%s1582_s21 + $0x138] sm:$0xf0]  ;;  %v996_v2 = vor.u32 %v1161_v58, %v995_v57 }
  0x71   : > { %644 = vmatpush.bf16.msra.mxu0 %v1028_v41  ;;  %v1136_v0 = vor.u32 %v1192_v61, %v1133_v62  ;;  %v1019_v3 = vld [vmem:[%s1582_s21 + $0x48] sm:$0xf]  ;;  %v1166_v4 = vld [vmem:[%s1582_s21 + $0x54] sm:$0xf0]  ;;  %v1000_v5 = vor.u32 %v1159_v59, %v997_v60  ;;  %v979_v6 = vld [vmem:[%s1582_s21] sm:$0xf] }
  0x72   : > { %718 = vmatpush.bf16.msrb.mxu1 %v1068_v38  ;;  %v1157_v7 = vld [vmem:[%s1582_s21 + $0xc] sm:$0xf0]  ;;  %v1155_v8 = vld [vmem:[%s1582_s21 + $0x4] sm:$0xf]  ;;  %v981_v9 = vld [vmem:[%s1582_s21 + $0x10] sm:$0xf0]  ;;  %v1020_v12 = vor.u32 %v1166_v4, %v1019_v3 }
  0x73   : > { %682 = vmatpush.bf16.msra.mxu2 %v1032_v45  ;;  %v1184_v10 = vld [vmem:[%s1582_s21 + $0xec] sm:$0xf]  ;;  %v1101_v11 = vld [vmem:[%s1582_s21 + $0xf8] sm:$0xf0]  ;;  %v963_v13 = vld [vmem:[%s1795_s1] sm:$0xf]  ;;  %v980_v14 = vor.u32 %v1157_v7, %v979_v6  ;;  %v984_v19 = vor.u32 %v1155_v8, %v981_v9 }
  0x74   : > { %1203 = vmatpush.bf16.msra.mxu3 %v1136_v0  ;;  %v1152_v15 = vld [vmem:[%s1795_s1 + $0x4] sm:$0xf0]  ;;  %v1162_v18 = vld [vmem:[%s1582_s21 + $0x34] sm:$0xf0]  ;;  %v1104_v20 = vor.u32 %v1184_v10, %v1101_v11  ;;  %v1188_v21 = vld [vmem:[%s1582_s21 + $0x10c] sm:$0xf] }
  0x75   : > { %645 = vmatpush.bf16.msra.mxu0 %v1012_v52  ;;  %v1003_v17 = vld [vmem:[%s1582_s21 + $0x28] sm:$0xf]  ;;  %v1117_v22 = vld [vmem:[%s1582_s21 + $0x118] sm:$0xf0]  ;;  %v1180_v23 = vld [vmem:[%s1582_s21 + $0xcc] sm:$0xf]  ;;  %v964_v26 = vor.u32 %v1152_v15, %v963_v13 }
  0x76   : > { %719 = vmatpush.bf16.msrb.mxu1 %v1052_v50  ;;  %v1085_v24 = vld [vmem:[%s1582_s21 + $0xd8] sm:$0xf0]  ;;  %v1120_v25 = vor.u32 %v1188_v21, %v1117_v22  ;;  %v1004_v27 = vor.u32 %v1162_v18, %v1003_v17  ;;  %v987_v28 = vld [vmem:[%s1582_s21 + $0x8] sm:$0xf]  ;;  %v1158_v29 = vld [vmem:[%s1582_s21 + $0x14] sm:$0xf0] }
  0x77   : > { %683 = vmatpush.bf16.msra.mxu2 %v1016_v56  ;;  %v1088_v30 = vor.u32 %v1180_v23, %v1085_v24  ;;  %v1176_v31 = vld [vmem:[%s1582_s21 + $0xac] sm:$0xf]  ;;  %v1069_v32 = vld [vmem:[%s1582_s21 + $0xb8] sm:$0xf0]  ;;  %v988_v33 = vor.u32 %v1158_v29, %v987_v28  ;;  %v971_v40 = vld [vmem:[%s1795_s1 + $0x10] sm:$0xf] }
  0x78   : > { %1204 = vmatpush.bf16.msra.mxu3 %v1120_v25  ;;  %v1072_v34 = vor.u32 %v1176_v31, %v1069_v32  ;;  %v1172_v35 = vld [vmem:[%s1582_s21 + $0x8c] sm:$0xf]  ;;  %v1053_v36 = vld [vmem:[%s1582_s21 + $0x98] sm:$0xf0]  ;;  %v1154_v41 = vld [vmem:[%s1795_s1 + $0x14] sm:$0xf0] }
  0x79   : > { %1138 = vmatmul.msk.bf16.gmra.mxu1 %vm633_vm0, %v1654_v1  ;;  %646 = vmatpush.bf16.msra.mxu0 %v996_v2  ;;  %v1056_v37 = vor.u32 %v1172_v35, %v1053_v36  ;;  %v1168_v38 = vld [vmem:[%s1582_s21 + $0x6c] sm:$0xf]  ;;  %v1037_v39 = vld [vmem:[%s1582_s21 + $0x78] sm:$0xf0]  ;;  %v972_v43 = vor.u32 %v1154_v41, %v971_v40  ;;  %s841_s28 = sshll.u32 %s838_s20, 4  ;;  %s842_s28 = int_to_ptr.hbm [resolvable:$true] %s841_s28 }
  0x7a   : > { %720 = vmatpush.bf16.msrb.mxu1 %v1036_v63  ;;  %v1040_v42 = vor.u32 %v1168_v38, %v1037_v39  ;;  %v1164_v44 = vld [vmem:[%s1582_s21 + $0x4c] sm:$0xf]  ;;  %v1021_v45 = vld [vmem:[%s1582_s21 + $0x58] sm:$0xf0]  ;;  %s1296_s30 = sshra.s32 %s842_s28, 4  ;;  %s1297_s30 = int_to_ptr.hbm [resolvable:$true] %s1296_s30 }
  0x7b   : > { %1140 = vmatmul.msk.bf16.gmra.mxu3 %vm633_vm0, %v1654_v1  ;;  %684 = vmatpush.bf16.msra.mxu2 %v1000_v5  ;;  %v1024_v46 = vor.u32 %v1164_v44, %v1021_v45  ;;  %v1160_v47 = vld [vmem:[%s1582_s21 + $0x2c] sm:$0xf]  ;;  %v1005_v48 = vld [vmem:[%s1582_s21 + $0x38] sm:$0xf0]  ;;  %p1303_p4 = scmp.lt.s32.totalorder %s1297_s30, %s1797_s3 }
  0x7c   : > { %v1008_v49 = vor.u32 %v1160_v47, %v1005_v48  ;;  %v1156_v50 = vld [vmem:[%s1582_s21 + $0xc] sm:$0xf]  ;;  %v989_v51 = vld [vmem:[%s1582_s21 + $0x18] sm:$0xf0]  ;;  %s959_s21 = sshll.u32 %s1579_s25, 6 }
  0x7d   : > { %647 = vmatpush.bf16.msra.mxu0 %v980_v14  ;;  %v992_v52 = vor.u32 %v1156_v50, %v989_v51  ;;  %s1709_s5 = scalar_lea.vmem [#allocation3], %s959_s21  ;;  %s1298_s21 = scalar_lea.hbm %s1297_s30, 128 }
  0x7e   : > { %721 = vmatpush.bf16.msrb.mxu1 %v1020_v12  ;;  %v391_v58 = vld [vmem:[%s1709_s5] sm:$0xff]  ;;  %v393_v63 = vld [vmem:[%s1709_s5 + $0x10] sm:$0xff]  ;;  %v1715_v4 = vld [vmem:[%s1709_s5 + $0x8] sm:$0xff]  ;;  %p1299_p1 = scmp.ne.s32.totalorder %s1297_s30, %s1298_s21  ;;  %p1304_p5 = scmp.lt.s32.totalorder %s1302_s8, %s1298_s21 }
  0x7f   : > { %685 = vmatpush.bf16.msra.mxu2 %v984_v19  ;;  %v399_v59 = vunpack.c.l.bf16 %v391_v58  ;;  %v403_v3 = vunpack.c.l.bf16 %v393_v63  ;;  %v401_v10 = vunpack.c.l.bf16 %v1715_v4  ;;  %v395_v13 = vld [vmem:[%s1709_s5 + $0x20] sm:$0xff]  ;;  %v404_v17 = vunpack.c.h.bf16 %v393_v63  ;;  %v396_v38 = vld [vmem:[%s1709_s5 + $0x28] sm:$0xff] }
  0x80   : > { %648 = vmatmul.bf16.vlgmr.msra.gmra.mxu0 %v964_v26  ;;  %v408_v35 = vunpack.c.h.bf16 %v395_v13  ;;  %p1300_p2 = pnand %p1299_p1, %p1461_p8  ;;  %p1305_p6 = por %p1304_p5, %p1303_p4 }
  0x81   : > { %754 = vmatpush.bf16.msrb.mxu0 %v1104_v20 }
  0x82   : > { %722 = vmatpush.bf16.msrb.mxu1 %v1004_v27  ;;  %686 = vmatmul.bf16.vlgmr.msra.gmra.mxu2 %v964_v26  ;;  %p1301_p3 = pneg %p1300_p2 }
  0x83   : > { %779 = vmatpush.bf16.msrb.mxu2 %v1136_v0 }
  0x84   : > { %p1306_p7 = pnand %p1305_p6, %p1301_p3 }
  0x85   : > { %755 = vmatpush.bf16.msrb.mxu0 %v1088_v30 }
  0x86   : > { %723 = vmatpush.bf16.msrb.mxu1 %v988_v33 }
  0x87   : > { %780 = vmatpush.bf16.msrb.mxu2 %v1120_v25  ;;  %v1727_v25 = vld [vmem:[%s1709_s5 + $0x18] sm:$0xff] }
  0x88   : > { %v405_v33 = vunpack.c.l.bf16 %v1727_v25 }
  0x89   : > { %756 = vmatpush.bf16.msrb.mxu0 %v1072_v34  ;;  %724 = vmatmul.bf16.vlgmr.msrb.gmra.mxu1 %v964_v26 }
  0x8a   : > { %1195 = vmatpush.bf16.msra.mxu1 %v1104_v20  ;;  %v407_v20 = vunpack.c.l.bf16 %v395_v13 }
  0x8b   : > { %1141 = vmatmul.msk.bf16.vlgmr.msrb.gmra.mxu3 %vm633_vm0, %v1611_v16 }
  0x8d   : > { %757 = vmatpush.bf16.msrb.mxu0 %v1056_v37 }
  0x8e   : > { %1196 = vmatpush.bf16.msra.mxu1 %v1088_v30  ;;  %v397_v30 = vld [vmem:[%s1709_s5 + $0x30] sm:$0xff] }
  0x90   : > { %653 = vmatmul.bf16.gmra.mxu0 %v972_v43 }
  0x91   : > { %758 = vmatpush.bf16.msrb.mxu0 %v1040_v42 }
  0x92   : > { %1197 = vmatpush.bf16.msra.mxu1 %v1072_v34  ;;  %691 = vmatmul.bf16.gmra.mxu2 %v972_v43 }
  0x95   : > { %759 = vmatpush.bf16.msrb.mxu0 %v1024_v46 }
  0x96   : > { %1198 = vmatpush.bf16.msra.mxu1 %v1056_v37  ;;  %v411_v37 = vunpack.c.l.bf16 %v397_v30 }
  0x99   : > { %760 = vmatpush.bf16.msrb.mxu0 %v1008_v49  ;;  %729 = vmatmul.bf16.gmra.mxu1 %v972_v43 }
  0x9a   : > { %1199 = vmatpush.bf16.msra.mxu1 %v1040_v42 }
  0x9b   : > { %1142 = vmatmul.msk.bf16.gmra.mxu3 %vm633_vm0, %v1654_v1 }
  0x9d   : > { %761 = vmatpush.bf16.msrb.mxu0 %v992_v52 }
  0x9e   : > { %1200 = vmatpush.bf16.msra.mxu1 %v1024_v46  ;;  %v409_v46 = vunpack.c.l.bf16 %v396_v38 }
  0xa0   : > { %762 = vmatmul.bf16.vlgmr.msrb.gmra.mxu0 %v964_v26 }
  0xa2   : > { %1201 = vmatpush.bf16.msra.mxu1 %v1008_v49  ;;  %1143 = vmatmul.msk.bf16.vlgmr.msrb.gmra.mxu2 %vm633_vm0, %v1611_v16 }
  0xa6   : > { %1202 = vmatpush.bf16.msra.mxu1 %v992_v52  ;;  %v412_v52 = vunpack.c.h.bf16 %v397_v30 }
  0xa9   : > { %767 = vmatmul.bf16.vlgmr.msra.gmra.mxu1 %v972_v43 }
  0xab   : > { %1144 = vmatmul.msk.bf16.vlgmr.msra.gmra.mxu3 %vm633_vm0, %v1654_v1  ;;  %v400_v1 = vunpack.c.h.bf16 %v391_v58  ;;  %v398_v58 = vld [vmem:[%s1709_s5 + $0x38] sm:$0xff] }
  0xe6   : > { %v668_v53 = vpop.f32.mrf.mxu1 }
  0xee   : > { %v706_v54 = vpop.f32.mrf.mxu3  ;;  %v670_v55 = vpop.f32.mrf.mxu1 }
  0xf6   : > { %v708_v56 = vpop.f32.mrf.mxu3  ;;  %v673_v57 = vpop.f32.mrf.mxu1 }
  0xfd   : > { %v649_v16 = vpop.f32.mrf.mxu0 }
  0xfe   : > { %v711_v60 = vpop.f32.mrf.mxu3  ;;  %v650_v61 = vadd.f32 %v649_v16, %v399_v59  ;;  %v675_v62 = vpop.f32.mrf.mxu1  ;;  %v402_v59 = vunpack.c.h.bf16 %v1715_v4  ;;  %v406_v4 = vunpack.c.h.bf16 %v1727_v25 }
 0x100   : > { %v669_v0 = vadd.f32 %v668_v53, %v650_v61 }
 0x102   : > { %v792_v2 = vmax.f32 %v669_v0, 0.0  ;;  %v413_v0 = vunpack.c.l.bf16 %v398_v58 }
 0x104   : > { %808 = vst [vmem:[%s1717_s7] sm:$0xff] %v792_v2 }
 0x105   : > { %v687_v5 = vpop.f32.mrf.mxu2  ;;  %v651_v8 = vpop.f32.mrf.mxu0 }
 0x106   : > { %v688_v6 = vadd.f32 %v687_v5, %v400_v1  ;;  %v1720_v7 = vpop.f32.mrf.mxu3  ;;  %v652_v9 = vadd.f32 %v651_v8, %v403_v3  ;;  %v725_v11 = vpop.f32.mrf.mxu1 }
 0x107   : > { %v726_v19 = vadd.f32 %v725_v11, %v401_v10  ;;  %v410_v10 = vunpack.c.h.bf16 %v396_v38 }
 0x108   : > { %v707_v12 = vadd.f32 %v706_v54, %v688_v6  ;;  %v671_v14 = vadd.f32 %v670_v55, %v652_v9 }
 0x10a   : > { %v793_v15 = vmax.f32 %v707_v12, 0.0  ;;  %v796_v18 = vmax.f32 %v671_v14, 0.0 }
 0x10c   : > { %809 = vst [vmem:[%s1717_s7 + $0x8] sm:$0xff] %v793_v15 }
 0x10d   : > { %812 = vst [vmem:[%s1717_s7 + $0x20] sm:$0xff] %v796_v18  ;;  %v689_v21 = vpop.f32.mrf.mxu2  ;;  %v654_v24 = vpop.f32.mrf.mxu0 }
 0x10e   : > { %v690_v22 = vadd.f32 %v689_v21, %v404_v17  ;;  %v744_v23 = vpop.f32.mrf.mxu3  ;;  %v655_v27 = vadd.f32 %v654_v24, %v407_v20  ;;  %v727_v28 = vpop.f32.mrf.mxu1 }
 0x10f   : > { %v745_v26 = vadd.f32 %v744_v23, %v726_v19  ;;  %v728_v39 = vadd.f32 %v727_v28, %v405_v33  ;;  %v414_v23 = vunpack.c.h.bf16 %v398_v58 }
 0x110   : > { %v709_v29 = vadd.f32 %v708_v56, %v690_v22  ;;  %v674_v32 = vadd.f32 %v673_v57, %v655_v27 }
 0x111   : > { %v794_v31 = vmax.f32 %v745_v26, 0.0 }
 0x112   : > { %v797_v34 = vmax.f32 %v709_v29, 0.0  ;;  %v800_v36 = vmax.f32 %v674_v32, 0.0 }
 0x113   : > { %810 = vst [vmem:[%s1717_s7 + $0x10] sm:$0xff] %v794_v31 }
 0x114   : > { %813 = vst [vmem:[%s1717_s7 + $0x28] sm:$0xff] %v797_v34 }
 0x115   : > { %816 = vst [vmem:[%s1717_s7 + $0x40] sm:$0xff] %v800_v36  ;;  %v692_v40 = vpop.f32.mrf.mxu2  ;;  %v656_v43 = vpop.f32.mrf.mxu0 }
 0x116   : > { %v693_v41 = vadd.f32 %v692_v40, %v408_v35  ;;  %v746_v42 = vpop.f32.mrf.mxu3  ;;  %v657_v45 = vadd.f32 %v656_v43, %v411_v37  ;;  %v730_v47 = vpop.f32.mrf.mxu1 }
 0x117   : > { %v747_v44 = vadd.f32 %v746_v42, %v728_v39  ;;  %v731_v54 = vadd.f32 %v730_v47, %v409_v46 }
 0x118   : > { %v712_v48 = vadd.f32 %v711_v60, %v693_v41  ;;  %v676_v50 = vadd.f32 %v675_v62, %v657_v45 }
 0x119   : > { %v798_v49 = vmax.f32 %v747_v44, 0.0 }
 0x11a   : > { %v801_v51 = vmax.f32 %v712_v48, 0.0  ;;  %v804_v53 = vmax.f32 %v676_v50, 0.0 }
 0x11b   : > { %814 = vst [vmem:[%s1717_s7 + $0x30] sm:$0xff] %v798_v49 }
 0x11c   : > { %817 = vst [vmem:[%s1717_s7 + $0x48] sm:$0xff] %v801_v51 }
 0x11d   : > { %820 = vst [vmem:[%s1717_s7 + $0x60] sm:$0xff] %v804_v53  ;;  %v694_v55 = vpop.f32.mrf.mxu2  ;;  %v763_v16 = vpop.f32.mrf.mxu0 }
 0x11e   : > { %v695_v56 = vadd.f32 %v694_v55, %v412_v52  ;;  %v749_v57 = vpop.f32.mrf.mxu3  ;;  %v732_v60 = vpop.f32.mrf.mxu1  ;;  %v764_v2 = vadd.f32 %v763_v16, %v402_v59 }
 0x11f   : > { %v750_v61 = vadd.f32 %v749_v57, %v731_v54  ;;  %v733_v3 = vadd.f32 %v732_v60, %v413_v0 }
 0x120   : > { %v714_v62 = vadd.f32 %v1720_v7, %v695_v56 }
 0x121   : > { %v802_v63 = vmax.f32 %v750_v61, 0.0 }
 0x122   : > { %v805_v1 = vmax.f32 %v714_v62, 0.0 }
 0x123   : > { %818 = vst [vmem:[%s1717_s7 + $0x50] sm:$0xff] %v802_v63 }
 0x124   : > { %821 = vst [vmem:[%s1717_s7 + $0x68] sm:$0xff] %v805_v1 }
 0x125   : > { %v782_v5 = vpop.f32.mrf.mxu2  ;;  %v765_v11 = vpop.f32.mrf.mxu0 }
 0x126   : > { %v751_v6 = vpop.f32.mrf.mxu3  ;;  %v783_v8 = vadd.f32 %v782_v5, %v764_v2  ;;  %v768_v12 = vpop.f32.mrf.mxu1  ;;  %v766_v14 = vadd.f32 %v765_v11, %v406_v4 }
 0x127   : > { %v752_v9 = vadd.f32 %v751_v6, %v733_v3  ;;  %v769_v15 = vadd.f32 %v768_v12, %v410_v10 }
 0x128   : > { %v795_v7 = vmax.f32 %v783_v8, 0.0 }
 0x129   : > { %v806_v13 = vmax.f32 %v752_v9, 0.0 }
 0x12a   : > { %811 = vst [vmem:[%s1717_s7 + $0x18] sm:$0xff] %v795_v7 }
 0x12b   : > { %822 = vst [vmem:[%s1717_s7 + $0x70] sm:$0xff] %v806_v13 }
 0x12d   : > { %v784_v17 = vpop.f32.mrf.mxu2 }
 0x12e   : > { %v785_v18 = vadd.f32 %v784_v17, %v766_v14  ;;  %v787_v19 = vpop.f32.mrf.mxu3  ;;  %v770_v24 = vpop.f32.mrf.mxu1 }
 0x12f   : > { %v788_v20 = vadd.f32 %v787_v19, %v769_v15  ;;  %v771_v25 = vadd.f32 %v770_v24, %v414_v23 }
 0x130   : > { %v799_v21 = vmax.f32 %v785_v18, 0.0 }
 0x131   : > { %v803_v22 = vmax.f32 %v788_v20, 0.0 }
 0x132   : > { %815 = vst [vmem:[%s1717_s7 + $0x38] sm:$0xff] %v799_v21 }
 0x133   : > { %819 = vst [vmem:[%s1717_s7 + $0x58] sm:$0xff] %v803_v22 }
 0x136   : > { %v789_v26 = vpop.f32.mrf.mxu3 }
 0x137   : > { %v790_v27 = vadd.f32 %v789_v26, %v771_v25 }
 0x139   : > { %v807_v28 = vmax.f32 %v790_v27, 0.0 }
 0x13b   : > { %823 = vst [vmem:[%s1717_s7 + $0x78] sm:$0xff] %v807_v28 }
 0x13c   : > { %1309 = shalt.err (!%p1306_p7)
}
 0x13d   : > { %s1378_s25 = smov 512   ;;  %s1379_s7 = smov 1024  }
 0x13e   : > { %s1380_s11 = smov 32  }
 0x13f   : > { %1208 = dma.vmem_to_hbm [thread:$0]  (%p1461_p8), %s840_s24, 2048, %s842_s28, %s825_s29, %s1378_s25, %s1379_s7, %s1380_s11  }
 0x140 PF: > { %p1214_p10 = scmp.ge.s32.totalorder %s1376_s19, 2  ;;  %s856_s15 = sand.u32 1, %s1348_s12  }
 0x141   : > { %s857_s16 = scalar_lea.sflag [#allocation5], %s856_s15 }
 0x142   : > { %p1211_p11 = pnand %p1214_p10, %p1465_p9 }
 0x144   : > { %p1212_p12 = pneg %p1211_p11 }
 0x146   : > { %1343 = dma.done.wait (%p1212_p12), %s857_s16, 2048  }
 0x147   : > { %1345 = vsyncadd (%p1212_p12), %s857_s16, 4294965248  ;;  %s16_s19 = sadd.s32 1, %s1376_s19   ;;  %s1801_s12 = smov %s1352_s13 }
 0x148   : > { %p13_p13 = scmp.ge.s32.totalorder %s16_s19, 6   ;;  %s1802_s13 = smov %s1356_s14 }
 0x149   : > { %s1803_s14 = smov %s1473_s4  ;;  %s1804_s15 = smov %s1368_s17 }
 0x14a   : > { %s1805_s16 = smov %s1372_s18  ;;  %s1806_s17 = smov %s1809_s22 }
 0x14b   : > { %s1807_s18 = smov %s1813_s23  ;;  %15 = sbr.rel (!%p13_p13) target bundleno = 5 (0x5), region = 126 }
 0x150   :  { %863 = vsyncpa [#allocation5], 1 }
 0x151   :  { %865 = vsyncpa [#allocation5 + $0x1], 1 }

</bundles_post_ra>
